<compile_context>
chip_gen: v5e
topology: v5e:2x2
jax: 0.10.0
libtpu: 0.0.40
codegen_flags: <defaults>
</compile_context>

<pallas_src>
import functools

import jax
import jax.numpy as jnp
from jax.experimental import pallas as pl
from jax.experimental.pallas import tpu as pltpu

SPECIAL_SYMBOLS = 3  # undreamt data.SPECIAL_SYMBOLS
NEG_INF = -1e30


def _round_up(x, m):
    return (x + m - 1) // m * m


def _gru_cell(gi, gh, h, Hp):
    # PyTorch GRUCell gate order: r, z, n. Gate blocks are Hp-wide (128-aligned).
    r = jax.nn.sigmoid(gi[:, 0:Hp] + gh[:, 0:Hp])
    z = jax.nn.sigmoid(gi[:, Hp:2 * Hp] + gh[:, Hp:2 * Hp])
    n = jnp.tanh(gi[:, 2 * Hp:3 * Hp] + r * gh[:, 2 * Hp:3 * Hp])
    return (1.0 - z) * n + z * h


# --------------------------------------------------------------------------
# Pallas kernel: one grid step == one batch-chunk x time_block timesteps
# --------------------------------------------------------------------------
def _decoder_kernel(num_layers, hidden_size, time_block, matmul_dtype,
                    approx_recip, *refs):
    Hp = hidden_size
    n_w = 5 + 4 * (num_layers - 1) + 5
    emb_ref, ctx_ref, maskb_ref, prev_out_ref, h0_ref = refs[:5]
    w_refs = refs[5:5 + n_w]
    scores_ref, hidden_ref, output_ref = refs[5 + n_w:]

    tb = pl.program_id(1)

    # Initialize the carried state (resident output blocks) at the start of the
    # time loop for this batch chunk.
    @pl.when(tb == 0)
    def _init():
        output_ref[...] = prev_out_ref[...]
        hidden_ref[...] = h0_ref[...]

    # Constant-index blocks: load once per grid step. Weights arrive
    # pre-transposed / pre-cast, so there are no in-kernel .T relayouts.
    w_emb0 = w_refs[0][...]
    w_feed0 = w_refs[1][...]
    b_ih0 = w_refs[2][...]
    b_hh0 = w_refs[3][...]
    w_hh0 = w_refs[4][...]
    deep_w = []
    for l in range(1, num_layers):
        base = 5 + 4 * (l - 1)
        deep_w.append((w_refs[base][...], w_refs[base + 1][...],
                       w_refs[base + 2][...], w_refs[base + 3][...]))
    w_align = w_refs[n_w - 5][...]
    w_ctx = w_refs[n_w - 4][...]
    w_query = w_refs[n_w - 3][...]
    w_gen = w_refs[n_w - 2][...]
    b_gen = w_refs[n_w - 1][...]
    ctx = ctx_ref[...]            # (Bc, Lp, Hp), matmul dtype
    mask_bias = maskb_ref[...]    # (Bc, Lp), f32 additive bias (0 / -1e30)

    def dot32(a, b):
        return jnp.dot(a, b, preferred_element_type=jnp.float32)

    # time_block timesteps per grid step (amortizes per-step pipeline overhead).
    for kt in range(time_block):
        emb = emb_ref[kt]                                   # (Bc, Ep)
        feed = output_ref[...].astype(matmul_dtype)         # input feeding

        # ---- StackedGRU ----
        # Layer 0: w_ih pre-split into (embedding, feed) halves -> no per-step concat.
        h = hidden_ref[0]
        gi = dot32(emb, w_emb0) + dot32(feed, w_feed0) + b_ih0
        gh = dot32(h.astype(matmul_dtype), w_hh0) + b_hh0
        h = _gru_cell(gi, gh, h, Hp)
        hidden_ref[0] = h
        x = h
        for l, (w_ih, b_ih, b_hh, w_hh) in enumerate(deep_w, start=1):
            h = hidden_ref[l]
            gi = dot32(x.astype(matmul_dtype), w_ih) + b_ih
            gh = dot32(h.astype(matmul_dtype), w_hh) + b_hh
            h = _gru_cell(gi, gh, h, Hp)
            hidden_ref[l] = h
            x = h                                           # dropout(p=0) == identity
        rnn_out = x                                         # (Bc, Hp) f32
        rnn_md = rnn_out.astype(matmul_dtype)

        # ---- GlobalAttention ('general'); contractions routed to the MXU ----
        q = dot32(rnn_md, w_align)                          # (Bc, Hp)
        align = jnp.einsum('bqh,blh->bql',
                           q.astype(matmul_dtype)[:, None, :], ctx,
                           preferred_element_type=jnp.float32)[:, 0, :]
        align = align + mask_bias                           # additive mask bias
        align = align - jnp.max(align, axis=1, keepdims=True)
        e = jnp.exp(align)
        denom = jnp.sum(e, axis=1, keepdims=True)
        if approx_recip:
            attw = e * pl.reciprocal(denom, approx=True)    # EUP slot, frees VALU
        else:
            attw = e / denom
        wctx = jnp.einsum('bql,blh->bqh',
                          attw.astype(matmul_dtype)[:, None, :], ctx,
                          preferred_element_type=jnp.float32)[:, 0, :]
        att_out = jnp.tanh(dot32(wctx.astype(matmul_dtype), w_ctx)
                           + dot32(rnn_md, w_query))
        output_ref[...] = att_out                           # dropout(p=0) == identity

        # ---- Generator: log_softmax(Linear(att_out)) ----
        # Padded vocab columns carry a -1e30 bias -> they vanish from the LSE.
        logits = dot32(att_out.astype(matmul_dtype), w_gen) + b_gen
        m = jnp.max(logits, axis=1, keepdims=True)
        lse = jnp.log(jnp.sum(jnp.exp(logits - m), axis=1, keepdims=True)) + m
        scores_ref[kt] = logits - lse


# --------------------------------------------------------------------------
# Weight repacking helpers (per-gate padding + transpose, done once in HBM)
# --------------------------------------------------------------------------
def _pack_gate_weight(w, in_dim, in_pad, Hp):
    # w: (3H, in_dim) PyTorch layout -> (in_pad, 3*Hp), each gate padded separately.
    H = w.shape[0] // 3
    w = w.reshape(3, H, in_dim)
    w = jnp.pad(w, ((0, 0), (0, Hp - H), (0, in_pad - in_dim)))
    return jnp.transpose(w, (2, 0, 1)).reshape(in_pad, 3 * Hp)


def _pack_gate_bias(b, Hp):
    H = b.shape[0] // 3
    b = jnp.pad(b.reshape(3, H), ((0, 0), (0, Hp - H)))
    return b.reshape(1, 3 * Hp).astype(jnp.float32)


def _pad2(a, shape):
    return jnp.pad(a, [(0, s - d) for d, s in zip(a.shape, shape)])


# --------------------------------------------------------------------------
# Wrapper (plain JAX glue: embedding gather, padding/layout, pallas_call)
# --------------------------------------------------------------------------
def rnn_attention_decoder(ids, lengths, params, hidden, context, context_mask,
                          prev_output, *, matmul_dtype=jnp.bfloat16,
                          time_block=4, batch_splits=1, approx_recip=None):
    """Forward pass; returns the default path (scores, hidden, output)."""
    del lengths  # unused by the PyTorch forward as well
    if approx_recip is None:
        approx_recip = jnp.dtype(matmul_dtype) != jnp.dtype(jnp.float32)

    T, B = ids.shape
    E = params['word_emb'].shape[1]
    H = hidden.shape[-1]
    L = context.shape[0]
    V = params['w_gen'].shape[0]
    layers = len(params['gru'])

    # Lane/sublane-aligned padded sizes.
    Ep = _round_up(E, 128)
    Hp = _round_up(H, 128)
    Vp = _round_up(V, 128)
    Lp = _round_up(L, 8)
    Bp = _round_up(B, 8 * batch_splits)
    Bc = Bp // batch_splits
    time_block = max(d for d in range(1, max(1, time_block) + 1) if T % d == 0)

    # data.word_ids / data.special_ids equivalent + embedding gather.
    word_ids = jnp.where(ids > SPECIAL_SYMBOLS, ids - SPECIAL_SYMBOLS, 0)
    special_ids = jnp.where(ids <= SPECIAL_SYMBOLS, ids, 0)
    embeddings = (params['word_emb'][word_ids]
                  + params['special_emb'][special_ids]).astype(jnp.float32)
    embeddings = _pad2(embeddings, (T, Bp, Ep)).astype(matmul_dtype)   # (T,Bp,Ep)

    ctx = jnp.transpose(context, (1, 0, 2))                             # (B,L,H)
    ctx = _pad2(ctx, (Bp, Lp, Hp)).astype(matmul_dtype)

    # Mask as additive bias (0 = valid, -1e30 = masked); padded rows/cols masked.
    mask_bias = jnp.where(context_mask > 0, 0.0, NEG_INF).astype(jnp.float32)
    mask_bias = jnp.pad(mask_bias, ((0, Bp - B), (0, Lp - L)),
                        constant_values=NEG_INF)

    prev_out_p = _pad2(prev_output.astype(jnp.float32), (Bp, Hp))
    hidden_p = _pad2(hidden.astype(jnp.float32), (layers, Bp, Hp))

    def cast(w):
        return w.astype(matmul_dtype)

    # Pre-transposed, per-gate padded, pre-cast weights (no in-kernel .T).
    g0 = params['gru'][0]
    weight_arrays = [
        cast(_pack_gate_weight(g0['w_ih'][:, :E], E, Ep, Hp)),   # layer-0 emb half
        cast(_pack_gate_weight(g0['w_ih'][:, E:], H, Hp, Hp)),   # layer-0 feed half
        _pack_gate_bias(g0['b_ih'], Hp),
        _pack_gate_bias(g0['b_hh'], Hp),
        cast(_pack_gate_weight(g0['w_hh'], H, Hp, Hp)),
    ]
    for l in range(1, layers):
        g = params['gru'][l]
        weight_arrays += [
            cast(_pack_gate_weight(g['w_ih'], H, Hp, Hp)),
            _pack_gate_bias(g['b_ih'], Hp),
            _pack_gate_bias(g['b_hh'], Hp),
            cast(_pack_gate_weight(g['w_hh'], H, Hp, Hp)),
        ]
    b_gen = jnp.concatenate([params['b_gen'].astype(jnp.float32),
                             jnp.full((Vp - V,), NEG_INF, jnp.float32)])
    weight_arrays += [
        cast(_pad2(params['w_align'].T, (Hp, Hp))),
        cast(_pad2(params['w_context'].T, (Hp, Hp))),
        cast(_pad2(params['w_query'].T, (Hp, Hp))),
        cast(_pad2(params['w_gen'].T, (Hp, Vp))),
        b_gen.reshape(1, Vp),
    ]

    def const_spec(a):
        zeros = (0,) * a.ndim
        return pl.BlockSpec(a.shape, lambda c, t, _z=zeros: _z)

    in_specs = [
        pl.BlockSpec((time_block, Bc, Ep), lambda c, t: (t, c, 0)),   # embeddings
        pl.BlockSpec((Bc, Lp, Hp), lambda c, t: (c, 0, 0)),           # context
        pl.BlockSpec((Bc, Lp), lambda c, t: (c, 0)),                  # mask bias
        pl.BlockSpec((Bc, Hp), lambda c, t: (c, 0)),                  # prev_output
        pl.BlockSpec((layers, Bc, Hp), lambda c, t: (0, c, 0)),       # initial hidden
    ] + [const_spec(w) for w in weight_arrays]

    out_specs = [
        pl.BlockSpec((time_block, Bc, Vp), lambda c, t: (t, c, 0)),   # scores
        pl.BlockSpec((layers, Bc, Hp), lambda c, t: (0, c, 0)),       # hidden (carried)
        pl.BlockSpec((Bc, Hp), lambda c, t: (c, 0)),                  # output (carried)
    ]
    out_shape = (
        jax.ShapeDtypeStruct((T, Bp, Vp), jnp.float32),
        jax.ShapeDtypeStruct((layers, Bp, Hp), jnp.float32),
        jax.ShapeDtypeStruct((Bp, Hp), jnp.float32),
    )

    kernel = functools.partial(_decoder_kernel, layers, Hp, time_block,
                               matmul_dtype, approx_recip)
    fn = pl.pallas_call(
        kernel,
        out_shape=out_shape,
        grid_spec=pltpu.PrefetchScalarGridSpec(
            num_scalar_prefetch=0,
            grid=(batch_splits, T // time_block),
            in_specs=in_specs,
            out_specs=out_specs,
        ),
        compiler_params=pltpu.CompilerParams(
            # batch chunks are independent (feeds both TCs on v7x);
            # time must stay sequential (recurrence).
            dimension_semantics=("parallel", "arbitrary")),
    )
    scores_p, hidden_out_p, output_p = fn(embeddings, ctx, mask_bias,
                                          prev_out_p, hidden_p, *weight_arrays)
    return (scores_p[:, :B, :V], hidden_out_p[:, :B, :H], output_p[:B, :H])


# --------------------------------------------------------------------------
# Deterministic parameter construction (synthetic; shapes per module __init__)
# --------------------------------------------------------------------------
def init_params(key, emb_size, hidden_size, layers, n_words, vocab):
    keys = iter(jax.random.split(key, 64))

    def u(shape, scale=0.1):
        return jax.random.normal(next(keys), shape, jnp.float32) * scale

    params = {}
    params['word_emb'] = u((n_words + 1, emb_size)).at[0].set(0.0)       # padding_idx=0
    params['special_emb'] = u((SPECIAL_SYMBOLS + 1, emb_size)).at[0].set(0.0)
    gru = []
    in_size = emb_size + hidden_size  # input_feeding=True
    for _ in range(layers):
        gru.append(dict(
            w_ih=u((3 * hidden_size, in_size)),
            w_hh=u((3 * hidden_size, hidden_size)),
            b_ih=u((3 * hidden_size,)),
            b_hh=u((3 * hidden_size,)),
        ))
        in_size = hidden_size
    params['gru'] = gru
    params['w_align'] = u((hidden_size, hidden_size))    # GlobalAttention 'general'
    params['w_context'] = u((hidden_size, hidden_size))  # linear_context (no bias)
    params['w_query'] = u((hidden_size, hidden_size))    # linear_query (no bias)
    params['w_gen'] = u((vocab, hidden_size))            # generator Linear
    params['b_gen'] = u((vocab,))
    return params


# --------------------------------------------------------------------------
# Pure-JAX reference (mirrors the PyTorch forward, default return path).
# matmul_dtype lets us build an apples-to-apples reference for the bf16 path.
# --------------------------------------------------------------------------
def reference_forward(ids, params, hidden, context, context_mask, prev_output,
                      matmul_dtype=jnp.float32):
    md = matmul_dtype

    def mm(a, b):
        return jnp.dot(a.astype(md), b.astype(md),
                       preferred_element_type=jnp.float32)

    T, B = ids.shape
    H = hidden.shape[-1]
    word_ids = jnp.where(ids > SPECIAL_SYMBOLS, ids - SPECIAL_SYMBOLS, 0)
    special_ids = jnp.where(ids <= SPECIAL_SYMBOLS, ids, 0)
    embeddings = params['word_emb'][word_ids] + params['special_emb'][special_ids]
    ctx = jnp.transpose(context, (1, 0, 2))
    output = prev_output
    h = hidden
    scores = []
    for t in range(T):
        x = jnp.concatenate([embeddings[t], output], axis=1)
        new_h = []
        for l, g in enumerate(params['gru']):
            gi = mm(x, g['w_ih'].T) + g['b_ih']
            gh = mm(h[l], g['w_hh'].T) + g['b_hh']
            r = jax.nn.sigmoid(gi[:, :H] + gh[:, :H])
            z = jax.nn.sigmoid(gi[:, H:2 * H] + gh[:, H:2 * H])
            n = jnp.tanh(gi[:, 2 * H:] + r * gh[:, 2 * H:])
            hl = (1.0 - z) * n + z * h[l]
            new_h.append(hl)
            x = hl
        h = jnp.stack(new_h)
        rnn_out = x
        q = mm(rnn_out, params['w_align'].T)
        align = jnp.einsum('bh,blh->bl', q.astype(md), ctx.astype(md),
                           preferred_element_type=jnp.float32)
        align = jnp.where(context_mask > 0.0, align, NEG_INF)
        w = jax.nn.softmax(align, axis=1)
        wctx = jnp.einsum('bl,blh->bh', w.astype(md), ctx.astype(md),
                          preferred_element_type=jnp.float32)
        output = jnp.tanh(mm(wctx, params['w_context'].T)
                          + mm(rnn_out, params['w_query'].T))
        logits = mm(output, params['w_gen'].T) + params['b_gen']
        scores.append(jax.nn.log_softmax(logits, axis=1))
    return jnp.stack(scores), h, output


if __name__ == "__main__":
    key = jax.random.PRNGKey(0)
    B, T, L, E, H = 2, 8, 8, 16, 32
    layers = 2
    n_words = 37
    vocab = SPECIAL_SYMBOLS + n_words

    k1, k2, k3, k4 = jax.random.split(key, 4)
    params = init_params(k1, E, H, layers, n_words, vocab)

    ids = jax.random.randint(k2, (T, B), 1, n_words + SPECIAL_SYMBOLS + 1).astype(jnp.int32)
    context = jax.random.normal(k3, (L, B, H), jnp.float32)
    lengths = jnp.array([L, L - 2], jnp.int32)
    context_mask = (jnp.arange(L)[None, :] < lengths[:, None]).astype(jnp.float32)  # (B, L)
    hidden0 = jax.random.normal(k4, (layers, B, H), jnp.float32)
    prev_output = jnp.zeros((B, H), jnp.float32)  # initial_output(batch_size)

    # ---- 1) precision-check path: f32 matmuls, exact reciprocal ----
    out32 = rnn_attention_decoder(
        ids, lengths, params, hidden0, context, context_mask, prev_output,
        matmul_dtype=jnp.float32, time_block=1, batch_splits=1,
        approx_recip=False)
    jax.block_until_ready(out32)
    ref32 = reference_forward(ids, params, hidden0, context, context_mask,
                              prev_output, jnp.float32)
    for got, ref, name in zip(out32, ref32, ("scores", "hidden", "output")):
        assert jnp.allclose(got, ref, atol=1e-4, rtol=1e-4), f"f32 {name} mismatch"

    # ---- 2) performance path: bf16 MXU operands, approx reciprocal,
    #         4 timesteps per grid step, 2-way batch split (v7x megacore) ----
    out16 = rnn_attention_decoder(
        ids, lengths, params, hidden0, context, context_mask, prev_output,
        matmul_dtype=jnp.bfloat16, time_block=4, batch_splits=2)
    jax.block_until_ready(out16)
    ref16 = reference_forward(ids, params, hidden0, context, context_mask,
                              prev_output, jnp.bfloat16)
    for got, ref, name in zip(out16, ref16, ("scores", "hidden", "output")):
        assert jnp.allclose(got, ref, atol=3e-2, rtol=3e-2), f"bf16 {name} mismatch"

    print("KERNEL_OK")
</pallas_src>

<mosaic_0001>
module attributes {stable_mosaic.version = 11 : i64} {
  func.func @_decoder_kernel(%arg0: i32, %arg1: i32, %arg2: memref<1x8x128xf32, #tpu.memory_space<vmem>>, %arg3: memref<8x8x128xf32, #tpu.memory_space<vmem>>, %arg4: memref<8x8xf32, #tpu.memory_space<vmem>>, %arg5: memref<8x128xf32, #tpu.memory_space<vmem>>, %arg6: memref<2x8x128xf32, #tpu.memory_space<vmem>>, %arg7: memref<128x384xf32, #tpu.memory_space<vmem>>, %arg8: memref<128x384xf32, #tpu.memory_space<vmem>>, %arg9: memref<1x384xf32, #tpu.memory_space<vmem>>, %arg10: memref<1x384xf32, #tpu.memory_space<vmem>>, %arg11: memref<128x384xf32, #tpu.memory_space<vmem>>, %arg12: memref<128x384xf32, #tpu.memory_space<vmem>>, %arg13: memref<1x384xf32, #tpu.memory_space<vmem>>, %arg14: memref<1x384xf32, #tpu.memory_space<vmem>>, %arg15: memref<128x384xf32, #tpu.memory_space<vmem>>, %arg16: memref<128x128xf32, #tpu.memory_space<vmem>>, %arg17: memref<128x128xf32, #tpu.memory_space<vmem>>, %arg18: memref<128x128xf32, #tpu.memory_space<vmem>>, %arg19: memref<128x128xf32, #tpu.memory_space<vmem>>, %arg20: memref<1x128xf32, #tpu.memory_space<vmem>>, %arg21: memref<1x8x128xf32, #tpu.memory_space<vmem>>, %arg22: memref<2x8x128xf32, #tpu.memory_space<vmem>>, %arg23: memref<8x128xf32, #tpu.memory_space<vmem>>) attributes {dimension_semantics = [#tpu.dimension_semantics<parallel>, #tpu.dimension_semantics<arbitrary>], iteration_bounds = array<i64: 1, 8>, scalar_prefetch = 0 : i64, scratch_operands = 0 : i64, tpu.core_type = #tpu.core_type<tc>, window_params = [{transform_indices = @transform_0, window_bounds = array<i64: 1, 8, 128>}, {transform_indices = @transform_1, window_bounds = array<i64: 8, 8, 128>}, {transform_indices = @transform_2, window_bounds = array<i64: 8, 8>}, {transform_indices = @transform_3, window_bounds = array<i64: 8, 128>}, {transform_indices = @transform_4, window_bounds = array<i64: 2, 8, 128>}, {pipeline_mode = #tpu.pipeline_mode<synchronous>, transform_indices = @transform_5, window_bounds = array<i64: 128, 384>}, {pipeline_mode = #tpu.pipeline_mode<synchronous>, transform_indices = @transform_6, window_bounds = array<i64: 128, 384>}, {pipeline_mode = #tpu.pipeline_mode<synchronous>, transform_indices = @transform_7, window_bounds = array<i64: 1, 384>}, {pipeline_mode = #tpu.pipeline_mode<synchronous>, transform_indices = @transform_8, window_bounds = array<i64: 1, 384>}, {pipeline_mode = #tpu.pipeline_mode<synchronous>, transform_indices = @transform_9, window_bounds = array<i64: 128, 384>}, {pipeline_mode = #tpu.pipeline_mode<synchronous>, transform_indices = @transform_10, window_bounds = array<i64: 128, 384>}, {pipeline_mode = #tpu.pipeline_mode<synchronous>, transform_indices = @transform_11, window_bounds = array<i64: 1, 384>}, {pipeline_mode = #tpu.pipeline_mode<synchronous>, transform_indices = @transform_12, window_bounds = array<i64: 1, 384>}, {pipeline_mode = #tpu.pipeline_mode<synchronous>, transform_indices = @transform_13, window_bounds = array<i64: 128, 384>}, {pipeline_mode = #tpu.pipeline_mode<synchronous>, transform_indices = @transform_14, window_bounds = array<i64: 128, 128>}, {pipeline_mode = #tpu.pipeline_mode<synchronous>, transform_indices = @transform_15, window_bounds = array<i64: 128, 128>}, {pipeline_mode = #tpu.pipeline_mode<synchronous>, transform_indices = @transform_16, window_bounds = array<i64: 128, 128>}, {pipeline_mode = #tpu.pipeline_mode<synchronous>, transform_indices = @transform_17, window_bounds = array<i64: 128, 128>}, {pipeline_mode = #tpu.pipeline_mode<synchronous>, transform_indices = @transform_18, window_bounds = array<i64: 1, 128>}, {transform_indices = @transform_19, window_bounds = array<i64: 1, 8, 128>}, {transform_indices = @transform_20, window_bounds = array<i64: 2, 8, 128>}, {transform_indices = @transform_21, window_bounds = array<i64: 8, 128>}]} {
    %c0_i32 = arith.constant 0 : i32
    %0 = arith.cmpi eq, %arg1, %c0_i32 : i32
    %1 = arith.extui %0 : i1 to i32
    %c0_i32_0 = arith.constant 0 : i32
    %2 = arith.cmpi ne, %1, %c0_i32_0 : i32
    scf.if %2 {
      %c0_74 = arith.constant 0 : index
      %c0_75 = arith.constant 0 : index
      %137 = vector.load %arg5[%c0_74, %c0_75] : memref<8x128xf32, #tpu.memory_space<vmem>>, vector<8x128xf32>
      %c0_76 = arith.constant 0 : index
      %c0_77 = arith.constant 0 : index
      %138 = vector.load %arg23[%c0_76, %c0_77] : memref<8x128xf32, #tpu.memory_space<vmem>>, vector<8x128xf32>
      tpu.vector_store %arg23[%c0_76, %c0_77], %137 {strides = array<i32>} : memref<8x128xf32, #tpu.memory_space<vmem>>, vector<8x128xf32>,
      %c0_78 = arith.constant 0 : index
      %c0_79 = arith.constant 0 : index
      %c0_80 = arith.constant 0 : index
      %139 = vector.load %arg6[%c0_78, %c0_79, %c0_80] : memref<2x8x128xf32, #tpu.memory_space<vmem>>, vector<2x8x128xf32>
      %c0_81 = arith.constant 0 : index
      %c0_82 = arith.constant 0 : index
      %c0_83 = arith.constant 0 : index
      %140 = vector.load %arg22[%c0_81, %c0_82, %c0_83] : memref<2x8x128xf32, #tpu.memory_space<vmem>>, vector<2x8x128xf32>
      tpu.vector_store %arg22[%c0_81, %c0_82, %c0_83], %139 {strides = array<i32>} : memref<2x8x128xf32, #tpu.memory_space<vmem>>, vector<2x8x128xf32>,
    } else {
    }
    %c0 = arith.constant 0 : index
    %c0_1 = arith.constant 0 : index
    %3 = vector.load %arg7[%c0, %c0_1] : memref<128x384xf32, #tpu.memory_space<vmem>>, vector<128x384xf32>
    %c0_2 = arith.constant 0 : index
    %c0_3 = arith.constant 0 : index
    %4 = vector.load %arg8[%c0_2, %c0_3] : memref<128x384xf32, #tpu.memory_space<vmem>>, vector<128x384xf32>
    %c0_4 = arith.constant 0 : index
    %c0_5 = arith.constant 0 : index
    %5 = vector.load %arg9[%c0_4, %c0_5] : memref<1x384xf32, #tpu.memory_space<vmem>>, vector<1x384xf32>
    %c0_6 = arith.constant 0 : index
    %c0_7 = arith.constant 0 : index
    %6 = vector.load %arg10[%c0_6, %c0_7] : memref<1x384xf32, #tpu.memory_space<vmem>>, vector<1x384xf32>
    %c0_8 = arith.constant 0 : index
    %c0_9 = arith.constant 0 : index
    %7 = vector.load %arg11[%c0_8, %c0_9] : memref<128x384xf32, #tpu.memory_space<vmem>>, vector<128x384xf32>
    %c0_10 = arith.constant 0 : index
    %c0_11 = arith.constant 0 : index
    %8 = vector.load %arg12[%c0_10, %c0_11] : memref<128x384xf32, #tpu.memory_space<vmem>>, vector<128x384xf32>
    %c0_12 = arith.constant 0 : index
    %c0_13 = arith.constant 0 : index
    %9 = vector.load %arg13[%c0_12, %c0_13] : memref<1x384xf32, #tpu.memory_space<vmem>>, vector<1x384xf32>
    %c0_14 = arith.constant 0 : index
    %c0_15 = arith.constant 0 : index
    %10 = vector.load %arg14[%c0_14, %c0_15] : memref<1x384xf32, #tpu.memory_space<vmem>>, vector<1x384xf32>
    %c0_16 = arith.constant 0 : index
    %c0_17 = arith.constant 0 : index
    %11 = vector.load %arg15[%c0_16, %c0_17] : memref<128x384xf32, #tpu.memory_space<vmem>>, vector<128x384xf32>
    %c0_18 = arith.constant 0 : index
    %c0_19 = arith.constant 0 : index
    %12 = vector.load %arg16[%c0_18, %c0_19] : memref<128x128xf32, #tpu.memory_space<vmem>>, vector<128x128xf32>
    %c0_20 = arith.constant 0 : index
    %c0_21 = arith.constant 0 : index
    %13 = vector.load %arg17[%c0_20, %c0_21] : memref<128x128xf32, #tpu.memory_space<vmem>>, vector<128x128xf32>
    %c0_22 = arith.constant 0 : index
    %c0_23 = arith.constant 0 : index
    %14 = vector.load %arg18[%c0_22, %c0_23] : memref<128x128xf32, #tpu.memory_space<vmem>>, vector<128x128xf32>
    %c0_24 = arith.constant 0 : index
    %c0_25 = arith.constant 0 : index
    %15 = vector.load %arg19[%c0_24, %c0_25] : memref<128x128xf32, #tpu.memory_space<vmem>>, vector<128x128xf32>
    %c0_26 = arith.constant 0 : index
    %c0_27 = arith.constant 0 : index
    %16 = vector.load %arg20[%c0_26, %c0_27] : memref<1x128xf32, #tpu.memory_space<vmem>>, vector<1x128xf32>
    %c0_28 = arith.constant 0 : index
    %c0_29 = arith.constant 0 : index
    %c0_30 = arith.constant 0 : index
    %17 = vector.load %arg3[%c0_28, %c0_29, %c0_30] : memref<8x8x128xf32, #tpu.memory_space<vmem>>, vector<8x8x128xf32>
    %c0_31 = arith.constant 0 : index
    %c0_32 = arith.constant 0 : index
    %18 = vector.load %arg4[%c0_31, %c0_32] : memref<8x8xf32, #tpu.memory_space<vmem>>, vector<8x8xf32>
    %c0_33 = arith.constant 0 : index
    %c0_34 = arith.constant 0 : index
    %c0_35 = arith.constant 0 : index
    %19 = vector.load %arg2[%c0_33, %c0_34, %c0_35] : memref<1x8x128xf32, #tpu.memory_space<vmem>>, vector<1x8x128xf32>
    %20 = vector.shape_cast %19 : vector<1x8x128xf32> to vector<8x128xf32>
    %c0_36 = arith.constant 0 : index
    %c0_37 = arith.constant 0 : index
    %21 = vector.load %arg23[%c0_36, %c0_37] : memref<8x128xf32, #tpu.memory_space<vmem>>, vector<8x128xf32>
    %c0_38 = arith.constant 0 : index
    %c0_39 = arith.constant 0 : index
    %c0_40 = arith.constant 0 : index
    %22 = vector.load %arg22[%c0_38, %c0_39, %c0_40] : memref<2x8x128xf32, #tpu.memory_space<vmem>>, vector<1x8x128xf32>
    %23 = vector.shape_cast %22 : vector<1x8x128xf32> to vector<8x128xf32>
    %cst = arith.constant dense<0.000000e+00> : vector<8x384xf32>
    %24 = tpu.matmul %20, %3, %cst {dimension_numbers = #tpu.dot_dimension_numbers<[1], [0], [0], [1], [0, 0, 1, 1], [], []>} : vector<8x128xf32>, vector<128x384xf32>, vector<8x384xf32> -> vector<8x384xf32>
    %cst_41 = arith.constant dense<0.000000e+00> : vector<8x384xf32>
    %25 = tpu.matmul %21, %4, %cst_41 {dimension_numbers = #tpu.dot_dimension_numbers<[1], [0], [0], [1], [0, 0, 1, 1], [], []>} : vector<8x128xf32>, vector<128x384xf32>, vector<8x384xf32> -> vector<8x384xf32>
    %26 = arith.addf %24, %25 : vector<8x384xf32>
    %27 = vector.broadcast %5 : vector<1x384xf32> to vector<8x384xf32>
    %28 = arith.addf %26, %27 : vector<8x384xf32>
    %cst_42 = arith.constant dense<0.000000e+00> : vector<8x384xf32>
    %29 = tpu.matmul %23, %7, %cst_42 {dimension_numbers = #tpu.dot_dimension_numbers<[1], [0], [0], [1], [0, 0, 1, 1], [], []>} : vector<8x128xf32>, vector<128x384xf32>, vector<8x384xf32> -> vector<8x384xf32>
    %30 = vector.broadcast %6 : vector<1x384xf32> to vector<8x384xf32>
    %31 = arith.addf %29, %30 : vector<8x384xf32>
    %32 = vector.extract_strided_slice %28 {offsets = [0, 0], sizes = [8, 128], strides = [1, 1]} : vector<8x384xf32> to vector<8x128xf32>
    %33 = vector.extract_strided_slice %31 {offsets = [0, 0], sizes = [8, 128], strides = [1, 1]} : vector<8x384xf32> to vector<8x128xf32>
    %34 = arith.addf %32, %33 : vector<8x128xf32>
    %35 = arith.negf %34 : vector<8x128xf32>
    %36 = math.exp %35 : vector<8x128xf32>
    %cst_43 = arith.constant 1.000000e+00 : f32
    %37 = vector.broadcast %cst_43 : f32 to vector<8x128xf32>
    %38 = arith.addf %37, %36 : vector<8x128xf32>
    %39 = arith.divf %37, %38 : vector<8x128xf32>
    %40 = vector.extract_strided_slice %28 {offsets = [0, 128], sizes = [8, 128], strides = [1, 1]} : vector<8x384xf32> to vector<8x128xf32>
    %41 = vector.extract_strided_slice %31 {offsets = [0, 128], sizes = [8, 128], strides = [1, 1]} : vector<8x384xf32> to vector<8x128xf32>
    %42 = arith.addf %40, %41 : vector<8x128xf32>
    %43 = arith.negf %42 : vector<8x128xf32>
    %44 = math.exp %43 : vector<8x128xf32>
    %cst_44 = arith.constant 1.000000e+00 : f32
    %45 = vector.broadcast %cst_44 : f32 to vector<8x128xf32>
    %46 = arith.addf %45, %44 : vector<8x128xf32>
    %47 = arith.divf %45, %46 : vector<8x128xf32>
    %48 = vector.extract_strided_slice %28 {offsets = [0, 256], sizes = [8, 128], strides = [1, 1]} : vector<8x384xf32> to vector<8x128xf32>
    %49 = vector.extract_strided_slice %31 {offsets = [0, 256], sizes = [8, 128], strides = [1, 1]} : vector<8x384xf32> to vector<8x128xf32>
    %50 = arith.mulf %39, %49 : vector<8x128xf32>
    %51 = arith.addf %48, %50 : vector<8x128xf32>
    %52 = math.tanh %51 : vector<8x128xf32>
    %cst_45 = arith.constant 1.000000e+00 : f32
    %53 = vector.broadcast %cst_45 : f32 to vector<8x128xf32>
    %54 = arith.subf %53, %47 : vector<8x128xf32>
    %55 = arith.mulf %54, %52 : vector<8x128xf32>
    %56 = arith.mulf %47, %23 : vector<8x128xf32>
    %57 = arith.addf %55, %56 : vector<8x128xf32>
    %c0_46 = arith.constant 0 : index
    %c0_47 = arith.constant 0 : index
    %c0_48 = arith.constant 0 : index
    %58 = vector.load %arg22[%c0_46, %c0_47, %c0_48] : memref<2x8x128xf32, #tpu.memory_space<vmem>>, vector<1x8x128xf32>
    %59 = vector.shape_cast %58 : vector<1x8x128xf32> to vector<8x128xf32>
    %60 = vector.shape_cast %57 : vector<8x128xf32> to vector<1x8x128xf32>
    tpu.vector_store %arg22[%c0_46, %c0_47, %c0_48], %60 {strides = array<i32>} : memref<2x8x128xf32, #tpu.memory_space<vmem>>, vector<1x8x128xf32>,
    %c1 = arith.constant 1 : index
    %c0_49 = arith.constant 0 : index
    %c0_50 = arith.constant 0 : index
    %61 = vector.load %arg22[%c1, %c0_49, %c0_50] : memref<2x8x128xf32, #tpu.memory_space<vmem>>, vector<1x8x128xf32>
    %62 = vector.shape_cast %61 : vector<1x8x128xf32> to vector<8x128xf32>
    %cst_51 = arith.constant dense<0.000000e+00> : vector<8x384xf32>
    %63 = tpu.matmul %57, %8, %cst_51 {dimension_numbers = #tpu.dot_dimension_numbers<[1], [0], [0], [1], [0, 0, 1, 1], [], []>} : vector<8x128xf32>, vector<128x384xf32>, vector<8x384xf32> -> vector<8x384xf32>
    %64 = vector.broadcast %9 : vector<1x384xf32> to vector<8x384xf32>
    %65 = arith.addf %63, %64 : vector<8x384xf32>
    %cst_52 = arith.constant dense<0.000000e+00> : vector<8x384xf32>
    %66 = tpu.matmul %62, %11, %cst_52 {dimension_numbers = #tpu.dot_dimension_numbers<[1], [0], [0], [1], [0, 0, 1, 1], [], []>} : vector<8x128xf32>, vector<128x384xf32>, vector<8x384xf32> -> vector<8x384xf32>
    %67 = vector.broadcast %10 : vector<1x384xf32> to vector<8x384xf32>
    %68 = arith.addf %66, %67 : vector<8x384xf32>
    %69 = vector.extract_strided_slice %65 {offsets = [0, 0], sizes = [8, 128], strides = [1, 1]} : vector<8x384xf32> to vector<8x128xf32>
    %70 = vector.extract_strided_slice %68 {offsets = [0, 0], sizes = [8, 128], strides = [1, 1]} : vector<8x384xf32> to vector<8x128xf32>
    %71 = arith.addf %69, %70 : vector<8x128xf32>
    %72 = arith.negf %71 : vector<8x128xf32>
    %73 = math.exp %72 : vector<8x128xf32>
    %cst_53 = arith.constant 1.000000e+00 : f32
    %74 = vector.broadcast %cst_53 : f32 to vector<8x128xf32>
    %75 = arith.addf %74, %73 : vector<8x128xf32>
    %76 = arith.divf %74, %75 : vector<8x128xf32>
    %77 = vector.extract_strided_slice %65 {offsets = [0, 128], sizes = [8, 128], strides = [1, 1]} : vector<8x384xf32> to vector<8x128xf32>
    %78 = vector.extract_strided_slice %68 {offsets = [0, 128], sizes = [8, 128], strides = [1, 1]} : vector<8x384xf32> to vector<8x128xf32>
    %79 = arith.addf %77, %78 : vector<8x128xf32>
    %80 = arith.negf %79 : vector<8x128xf32>
    %81 = math.exp %80 : vector<8x128xf32>
    %cst_54 = arith.constant 1.000000e+00 : f32
    %82 = vector.broadcast %cst_54 : f32 to vector<8x128xf32>
    %83 = arith.addf %82, %81 : vector<8x128xf32>
    %84 = arith.divf %82, %83 : vector<8x128xf32>
    %85 = vector.extract_strided_slice %65 {offsets = [0, 256], sizes = [8, 128], strides = [1, 1]} : vector<8x384xf32> to vector<8x128xf32>
    %86 = vector.extract_strided_slice %68 {offsets = [0, 256], sizes = [8, 128], strides = [1, 1]} : vector<8x384xf32> to vector<8x128xf32>
    %87 = arith.mulf %76, %86 : vector<8x128xf32>
    %88 = arith.addf %85, %87 : vector<8x128xf32>
    %89 = math.tanh %88 : vector<8x128xf32>
    %cst_55 = arith.constant 1.000000e+00 : f32
    %90 = vector.broadcast %cst_55 : f32 to vector<8x128xf32>
    %91 = arith.subf %90, %84 : vector<8x128xf32>
    %92 = arith.mulf %91, %89 : vector<8x128xf32>
    %93 = arith.mulf %84, %62 : vector<8x128xf32>
    %94 = arith.addf %92, %93 : vector<8x128xf32>
    %c1_56 = arith.constant 1 : index
    %c0_57 = arith.constant 0 : index
    %c0_58 = arith.constant 0 : index
    %95 = vector.load %arg22[%c1_56, %c0_57, %c0_58] : memref<2x8x128xf32, #tpu.memory_space<vmem>>, vector<1x8x128xf32>
    %96 = vector.shape_cast %95 : vector<1x8x128xf32> to vector<8x128xf32>
    %97 = vector.shape_cast %94 : vector<8x128xf32> to vector<1x8x128xf32>
    tpu.vector_store %arg22[%c1_56, %c0_57, %c0_58], %97 {strides = array<i32>} : memref<2x8x128xf32, #tpu.memory_space<vmem>>, vector<1x8x128xf32>,
    %cst_59 = arith.constant dense<0.000000e+00> : vector<8x128xf32>
    %98 = tpu.matmul %94, %12, %cst_59 {dimension_numbers = #tpu.dot_dimension_numbers<[1], [0], [0], [1], [0, 0, 1, 1], [], []>} : vector<8x128xf32>, vector<128x128xf32>, vector<8x128xf32> -> vector<8x128xf32>
    %99 = vector.shape_cast %98 : vector<8x128xf32> to vector<8x1x128xf32>
    "tpu.trace_start"() <{level = 10 : i32, message = "bqh,blh->bql"}> : () -> ()
    %cst_60 = arith.constant dense<0.000000e+00> : vector<8x1x8xf32>
    %100 = tpu.matmul %99, %17, %cst_60 {dimension_numbers = #tpu.dot_dimension_numbers<[2], [2], [1], [1], [0, 0, 0, 1, 1, 1], [0], [0]>} : vector<8x1x128xf32>, vector<8x8x128xf32>, vector<8x1x8xf32> -> vector<8x1x8xf32>
    "tpu.trace_stop"() : () -> ()
    %101 = vector.shape_cast %100 : vector<8x1x8xf32> to vector<8x8xf32>
    %102 = arith.addf %101, %18 : vector<8x8xf32>
    %cst_61 = arith.constant dense<0xFF800000> : vector<8xf32>
    %103 = vector.multi_reduction <maximumf>, %102, %cst_61 [1] : vector<8x8xf32> to vector<8xf32>
    %104 = vector.shape_cast %103 : vector<8xf32> to vector<8x1xf32>
    %105 = vector.broadcast %104 : vector<8x1xf32> to vector<8x8xf32>
    %106 = arith.subf %102, %105 : vector<8x8xf32>
    %107 = math.exp %106 : vector<8x8xf32>
    %cst_62 = arith.constant dense<0.000000e+00> : vector<8xf32>
    %108 = vector.multi_reduction <add>, %107, %cst_62 [1] : vector<8x8xf32> to vector<8xf32>
    %109 = vector.shape_cast %108 : vector<8xf32> to vector<8x1xf32>
    %110 = vector.broadcast %109 : vector<8x1xf32> to vector<8x8xf32>
    %111 = arith.divf %107, %110 : vector<8x8xf32>
    %112 = vector.shape_cast %111 : vector<8x8xf32> to vector<8x1x8xf32>
    "tpu.trace_start"() <{level = 10 : i32, message = "bql,blh->bqh"}> : () -> ()
    %cst_63 = arith.constant dense<0.000000e+00> : vector<8x1x128xf32>
    %113 = tpu.matmul %112, %17, %cst_63 {dimension_numbers = #tpu.dot_dimension_numbers<[2], [1], [1], [2], [0, 0, 0, 1, 1, 2], [0], [0]>} : vector<8x1x8xf32>, vector<8x8x128xf32>, vector<8x1x128xf32> -> vector<8x1x128xf32>
    "tpu.trace_stop"() : () -> ()
    %114 = vector.shape_cast %113 : vector<8x1x128xf32> to vector<8x128xf32>
    %cst_64 = arith.constant dense<0.000000e+00> : vector<8x128xf32>
    %115 = tpu.matmul %114, %13, %cst_64 {dimension_numbers = #tpu.dot_dimension_numbers<[1], [0], [0], [1], [0, 0, 1, 1], [], []>} : vector<8x128xf32>, vector<128x128xf32>, vector<8x128xf32> -> vector<8x128xf32>
    %cst_65 = arith.constant dense<0.000000e+00> : vector<8x128xf32>
    %116 = tpu.matmul %94, %14, %cst_65 {dimension_numbers = #tpu.dot_dimension_numbers<[1], [0], [0], [1], [0, 0, 1, 1], [], []>} : vector<8x128xf32>, vector<128x128xf32>, vector<8x128xf32> -> vector<8x128xf32>
    %117 = arith.addf %115, %116 : vector<8x128xf32>
    %118 = math.tanh %117 : vector<8x128xf32>
    %c0_66 = arith.constant 0 : index
    %c0_67 = arith.constant 0 : index
    %119 = vector.load %arg23[%c0_66, %c0_67] : memref<8x128xf32, #tpu.memory_space<vmem>>, vector<8x128xf32>
    tpu.vector_store %arg23[%c0_66, %c0_67], %118 {strides = array<i32>} : memref<8x128xf32, #tpu.memory_space<vmem>>, vector<8x128xf32>,
    %cst_68 = arith.constant dense<0.000000e+00> : vector<8x128xf32>
    %120 = tpu.matmul %118, %15, %cst_68 {dimension_numbers = #tpu.dot_dimension_numbers<[1], [0], [0], [1], [0, 0, 1, 1], [], []>} : vector<8x128xf32>, vector<128x128xf32>, vector<8x128xf32> -> vector<8x128xf32>
    %121 = vector.broadcast %16 : vector<1x128xf32> to vector<8x128xf32>
    %122 = arith.addf %120, %121 : vector<8x128xf32>
    %cst_69 = arith.constant dense<0xFF800000> : vector<8xf32>
    %123 = vector.multi_reduction <maximumf>, %122, %cst_69 [1] : vector<8x128xf32> to vector<8xf32>
    %124 = vector.shape_cast %123 : vector<8xf32> to vector<8x1xf32>
    %125 = vector.broadcast %124 : vector<8x1xf32> to vector<8x128xf32>
    %126 = arith.subf %122, %125 : vector<8x128xf32>
    %127 = math.exp %126 : vector<8x128xf32>
    %cst_70 = arith.constant dense<0.000000e+00> : vector<8xf32>
    %128 = vector.multi_reduction <add>, %127, %cst_70 [1] : vector<8x128xf32> to vector<8xf32>
    %129 = vector.shape_cast %128 : vector<8xf32> to vector<8x1xf32>
    %130 = math.log %129 : vector<8x1xf32>
    %131 = arith.addf %130, %124 : vector<8x1xf32>
    %132 = vector.broadcast %131 : vector<8x1xf32> to vector<8x128xf32>
    %133 = arith.subf %122, %132 : vector<8x128xf32>
    %c0_71 = arith.constant 0 : index
    %c0_72 = arith.constant 0 : index
    %c0_73 = arith.constant 0 : index
    %134 = vector.load %arg21[%c0_71, %c0_72, %c0_73] : memref<1x8x128xf32, #tpu.memory_space<vmem>>, vector<1x8x128xf32>
    %135 = vector.shape_cast %134 : vector<1x8x128xf32> to vector<8x128xf32>
    %136 = vector.shape_cast %133 : vector<8x128xf32> to vector<1x8x128xf32>
    tpu.vector_store %arg21[%c0_71, %c0_72, %c0_73], %136 {strides = array<i32>} : memref<1x8x128xf32, #tpu.memory_space<vmem>>, vector<1x8x128xf32>,
    return
  }
  func.func @transform_0(%arg0: i32, %arg1: i32) -> (i32, i32, i32) {
    %c0_i32 = arith.constant 0 : i32
    %c0_i32_0 = arith.constant 0 : i32
    return %arg1, %arg0, %c0_i32 : i32, i32, i32
  }
  func.func @transform_1(%arg0: i32, %arg1: i32) -> (i32, i32, i32) {
    %c0_i32 = arith.constant 0 : i32
    %c0_i32_0 = arith.constant 0 : i32
    %c0_i32_1 = arith.constant 0 : i32
    return %arg0, %c0_i32, %c0_i32_0 : i32, i32, i32
  }
  func.func @transform_2(%arg0: i32, %arg1: i32) -> (i32, i32) {
    %c0_i32 = arith.constant 0 : i32
    %c0_i32_0 = arith.constant 0 : i32
    return %arg0, %c0_i32 : i32, i32
  }
  func.func @transform_3(%arg0: i32, %arg1: i32) -> (i32, i32) {
    %c0_i32 = arith.constant 0 : i32
    %c0_i32_0 = arith.constant 0 : i32
    return %arg0, %c0_i32 : i32, i32
  }
  func.func @transform_4(%arg0: i32, %arg1: i32) -> (i32, i32, i32) {
    %c0_i32 = arith.constant 0 : i32
    %c0_i32_0 = arith.constant 0 : i32
    %c0_i32_1 = arith.constant 0 : i32
    return %c0_i32, %arg0, %c0_i32_0 : i32, i32, i32
  }
  func.func @transform_5(%arg0: i32, %arg1: i32) -> (i32, i32) {
    %c0_i32 = arith.constant 0 : i32
    %c0_i32_0 = arith.constant 0 : i32
    %c0_i32_1 = arith.constant 0 : i32
    return %c0_i32, %c0_i32_0 : i32, i32
  }
  func.func @transform_6(%arg0: i32, %arg1: i32) -> (i32, i32) {
    %c0_i32 = arith.constant 0 : i32
    %c0_i32_0 = arith.constant 0 : i32
    %c0_i32_1 = arith.constant 0 : i32
    return %c0_i32, %c0_i32_0 : i32, i32
  }
  func.func @transform_7(%arg0: i32, %arg1: i32) -> (i32, i32) {
    %c0_i32 = arith.constant 0 : i32
    %c0_i32_0 = arith.constant 0 : i32
    %c0_i32_1 = arith.constant 0 : i32
    return %c0_i32, %c0_i32_0 : i32, i32
  }
  func.func @transform_8(%arg0: i32, %arg1: i32) -> (i32, i32) {
    %c0_i32 = arith.constant 0 : i32
    %c0_i32_0 = arith.constant 0 : i32
    %c0_i32_1 = arith.constant 0 : i32
    return %c0_i32, %c0_i32_0 : i32, i32
  }
  func.func @transform_9(%arg0: i32, %arg1: i32) -> (i32, i32) {
    %c0_i32 = arith.constant 0 : i32
    %c0_i32_0 = arith.constant 0 : i32
    %c0_i32_1 = arith.constant 0 : i32
    return %c0_i32, %c0_i32_0 : i32, i32
  }
  func.func @transform_10(%arg0: i32, %arg1: i32) -> (i32, i32) {
    %c0_i32 = arith.constant 0 : i32
    %c0_i32_0 = arith.constant 0 : i32
    %c0_i32_1 = arith.constant 0 : i32
    return %c0_i32, %c0_i32_0 : i32, i32
  }
  func.func @transform_11(%arg0: i32, %arg1: i32) -> (i32, i32) {
    %c0_i32 = arith.constant 0 : i32
    %c0_i32_0 = arith.constant 0 : i32
    %c0_i32_1 = arith.constant 0 : i32
    return %c0_i32, %c0_i32_0 : i32, i32
  }
  func.func @transform_12(%arg0: i32, %arg1: i32) -> (i32, i32) {
    %c0_i32 = arith.constant 0 : i32
    %c0_i32_0 = arith.constant 0 : i32
    %c0_i32_1 = arith.constant 0 : i32
    return %c0_i32, %c0_i32_0 : i32, i32
  }
  func.func @transform_13(%arg0: i32, %arg1: i32) -> (i32, i32) {
    %c0_i32 = arith.constant 0 : i32
    %c0_i32_0 = arith.constant 0 : i32
    %c0_i32_1 = arith.constant 0 : i32
    return %c0_i32, %c0_i32_0 : i32, i32
  }
  func.func @transform_14(%arg0: i32, %arg1: i32) -> (i32, i32) {
    %c0_i32 = arith.constant 0 : i32
    %c0_i32_0 = arith.constant 0 : i32
    %c0_i32_1 = arith.constant 0 : i32
    return %c0_i32, %c0_i32_0 : i32, i32
  }
  func.func @transform_15(%arg0: i32, %arg1: i32) -> (i32, i32) {
    %c0_i32 = arith.constant 0 : i32
    %c0_i32_0 = arith.constant 0 : i32
    %c0_i32_1 = arith.constant 0 : i32
    return %c0_i32, %c0_i32_0 : i32, i32
  }
  func.func @transform_16(%arg0: i32, %arg1: i32) -> (i32, i32) {
    %c0_i32 = arith.constant 0 : i32
    %c0_i32_0 = arith.constant 0 : i32
    %c0_i32_1 = arith.constant 0 : i32
    return %c0_i32, %c0_i32_0 : i32, i32
  }
  func.func @transform_17(%arg0: i32, %arg1: i32) -> (i32, i32) {
    %c0_i32 = arith.constant 0 : i32
    %c0_i32_0 = arith.constant 0 : i32
    %c0_i32_1 = arith.constant 0 : i32
    return %c0_i32, %c0_i32_0 : i32, i32
  }
  func.func @transform_18(%arg0: i32, %arg1: i32) -> (i32, i32) {
    %c0_i32 = arith.constant 0 : i32
    %c0_i32_0 = arith.constant 0 : i32
    %c0_i32_1 = arith.constant 0 : i32
    return %c0_i32, %c0_i32_0 : i32, i32
  }
  func.func @transform_19(%arg0: i32, %arg1: i32) -> (i32, i32, i32) {
    %c0_i32 = arith.constant 0 : i32
    %c0_i32_0 = arith.constant 0 : i32
    return %arg1, %arg0, %c0_i32 : i32, i32, i32
  }
  func.func @transform_20(%arg0: i32, %arg1: i32) -> (i32, i32, i32) {
    %c0_i32 = arith.constant 0 : i32
    %c0_i32_0 = arith.constant 0 : i32
    %c0_i32_1 = arith.constant 0 : i32
    return %c0_i32, %arg0, %c0_i32_0 : i32, i32, i32
  }
  func.func @transform_21(%arg0: i32, %arg1: i32) -> (i32, i32) {
    %c0_i32 = arith.constant 0 : i32
    %c0_i32_0 = arith.constant 0 : i32
    return %arg0, %c0_i32 : i32, i32
  }
}

</mosaic_0001>

<bundles_post_ra>
// kernel: tpu_custom_call.1
= control target key start
LH: loop header
LB: loop body
LE: loop exit
PB: predicated region body
PF: predicated region fallthrough
CT: control target
= control target key end

     0   :  { %s4377_s0 = inlined_call_operand.hbm [shape: f32[8,8,128], index: 0, kind: input, shape index: {}]   ;;  %s4378_s1 = inlined_call_operand.hbm [shape: f32[8,8,128], index: 1, kind: input, shape index: {}]   ;;  %s4379_s2 = inlined_call_operand.hbm [shape: f32[8,8], index: 2, kind: input, shape index: {}]   ;;  %s4380_s3 = inlined_call_operand.hbm [shape: f32[8,128], index: 3, kind: input, shape index: {}]   ;;  %s4381_s4 = inlined_call_operand.hbm [shape: f32[2,8,128], index: 4, kind: input, shape index: {}]   ;;  %s4382_s5 = inlined_call_operand.hbm [shape: f32[128,384], index: 5, kind: input, shape index: {}]   ;;  %s4383_s6 = inlined_call_operand.hbm [shape: f32[128,384], index: 6, kind: input, shape index: {}]   ;;  %s4384_s7 = inlined_call_operand.vmem [shape: f32[1,384], index: 7, kind: input, shape index: {}]   ;;  %s4385_s8 = inlined_call_operand.vmem [shape: f32[1,384], index: 8, kind: input, shape index: {}]   ;;  %s4386_s9 = inlined_call_operand.hbm [shape: f32[128,384], index: 9, kind: input, shape index: {}]   ;;  %s4387_s10 = inlined_call_operand.hbm [shape: f32[128,384], index: 10, kind: input, shape index: {}]   ;;  %s4388_s11 = inlined_call_operand.vmem [shape: f32[1,384], index: 11, kind: input, shape index: {}]   ;;  %s4389_s12 = inlined_call_operand.hbm [shape: f32[1,384], index: 12, kind: input, shape index: {}]   ;;  %s4390_s13 = inlined_call_operand.hbm [shape: f32[128,384], index: 13, kind: input, shape index: {}]   ;;  %s4391_s14 = inlined_call_operand.hbm [shape: f32[128,128], index: 14, kind: input, shape index: {}]   ;;  %s4392_s15 = inlined_call_operand.hbm [shape: f32[128,128], index: 15, kind: input, shape index: {}]   ;;  %s4393_s16 = inlined_call_operand.hbm [shape: f32[128,128], index: 16, kind: input, shape index: {}]   ;;  %s4394_s17 = inlined_call_operand.hbm [shape: f32[128,128], index: 17, kind: input, shape index: {}]   ;;  %s4395_s18 = inlined_call_operand.vmem [shape: f32[1,128], index: 18, kind: input, shape index: {}]   ;;  %s4396_s19 = inlined_call_operand.hbm [shape: f32[8,8,128], index: 19, kind: output, shape index: {0}]   ;;  %s4397_s20 = inlined_call_operand.hbm [shape: f32[2,8,128], index: 20, kind: output, shape index: {1}]   ;;  %s4398_s21 = inlined_call_operand.hbm [shape: f32[8,128], index: 21, kind: output, shape index: {2}]  }
   0x1   :  { %4417 = sst [smem:[#allocation43_spill]] %s4377_s0 }
   0x2   :  { %4418 = sst [smem:[#allocation44_spill]] %s4378_s1 }
   0x3   :  { %4419 = sst [smem:[#allocation45_spill]] %s4379_s2 }
   0x4   :  { %4420 = sst [smem:[#allocation46_spill]] %s4380_s3 }
   0x5   :  { %4421 = sst [smem:[#allocation47_spill]] %s4381_s4 }
   0x6   :  { %4422 = sst [smem:[#allocation48_spill]] %s4382_s5 }
   0x7   :  { %4423 = sst [smem:[#allocation49_spill]] %s4383_s6 }
   0x8   :  { %4424 = sst [smem:[#allocation50_spill]] %s4384_s7 }
   0x9   :  { %4425 = sst [smem:[#allocation51_spill]] %s4385_s8 }
   0xa   :  { %4426 = sst [smem:[#allocation52_spill]] %s4386_s9 }
   0xb   :  { %4427 = sst [smem:[#allocation53_spill]] %s4387_s10 }
   0xc   :  { %4428 = sst [smem:[#allocation54_spill]] %s4388_s11 }
   0xd   :  { %4429 = sst [smem:[#allocation55_spill]] %s4389_s12 }
   0xe   :  { %4430 = sst [smem:[#allocation56_spill]] %s4390_s13 }
   0xf   :  { %4431 = sst [smem:[#allocation57_spill]] %s4395_s18 }
  0x10   :  { %4432 = sst [smem:[#allocation58_spill]] %s4396_s19 }
  0x11   :  { %4433 = sst [smem:[#allocation59_spill]] %s4397_s20 }
  0x12   :  { %4434 = sst [smem:[#allocation60_spill]] %s4398_s21 }
  0x13   :  { %27 = vsyncpa [#allocation3], 0 }
  0x14   :  { %29 = vsyncpa [#allocation3 + $0x1], 0 }
  0x15   :  { %30 = vsyncpa [#allocation6], 0 }
  0x16   :  { %31 = vsyncpa [#allocation9], 0 }
  0x17   :  { %32 = vsyncpa [#allocation12], 0 }
  0x18   :  { %33 = vsyncpa [#allocation15], 0 }
  0x19   :  { %34 = vsyncpa [#allocation18], 0 }
  0x1a   :  { %35 = vsyncpa [#allocation21], 0 }
  0x1b   :  { %36 = vsyncpa [#allocation24], 0 }
  0x1c   :  { %37 = vsyncpa [#allocation4], 0 }
  0x1d   :  { %39 = vsyncpa [#allocation4 + $0x1], 0 }
  0x1e   :  { %40 = vsyncpa [#allocation28], 0  ;;  %s3840_s2 = smov 0   ;;  %s3842_s25 = smov 0  }
  0x1f   :  { %s3844_s26 = smov 0   ;;  %s3846_s27 = smov 0  }
  0x20   :  { %s3848_s3 = smov 0   ;;  %s3850_s28 = smov 0  }
  0x21 LB: > { %4435 = sst [smem:[#allocation40_spill]] %s3698_s27  ;;  %s4399_s29 = sadd.s32 4294967295, %s3706_s28   ;;  %s3706_s28 = sphi %s3850_s28, %s46_s28   ;;  %s3702_s3 = sphi %s3848_s3, %s4493_s3   ;;  %s3698_s27 = sphi %s3846_s27, %s4492_s27   ;;  %s3694_s26 = sphi %s3844_s26, %s4491_s26   ;;  %s3690_s25 = sphi %s3842_s25, %s4490_s25   ;;  %s3686_s2 = sphi %s3840_s2, %s4489_s2  }
  0x22   : > { %p2748_p0 = scmp.ge.s32.totalorder %s3706_s28, 1  ;;  %p3874_p1 = scmp.eq.s32.totalorder %s4399_s29, 0 }
  0x23   : > { %p569_p2 = scmp.lt.s32.totalorder %s3706_s28, 9  ;;  %s4438_s5 = sld [smem:[#allocation44_spill]] }
  0x24   : > { %s4436_s0 = scalar_select %p3874_p1, 1, 0 }
  0x25   : > { %p3882_p3 = pnand %p2748_p0, %p569_p2  ;;  %s3708_s1 = smov [#allocation5]  }
  0x26   : > { %4437 = sst [smem:[#allocation41_spill]] %s4436_s0  ;;  %s585_s24 = sshll.u32 %s3708_s1, 4  ;;  %s586_s24 = int_to_ptr.vmem [resolvable:$true] %s585_s24 }
  0x27   : > { %s4439_s23 = scalar_select %p3882_p3, 1, 0 }
  0x28   : > { %p2872_p4 = pneg %p3882_p3  ;;  %s4442_s4 = sld [smem:[#allocation46_spill]] }
  0x29   : > { %s583_s22 = sshll.u32 %s4438_s5, 4  ;;  %4440 = sst [smem:[#allocation42_spill]] %s4439_s23  ;;  %s584_s22 = int_to_ptr.hbm [resolvable:$true] %s583_s22 }
  0x2a   : > { %p3890_p5 = pnand %p2872_p4, %p3874_p1  ;;  %s4404_s5 = smov 128  }
  0x2b   : > { %s3710_s20 = smov 8   ;;  %s3711_s1 = smov [#allocation8]  }
  0x2c   : > { %2875 = dma.hbm_to_vmem [thread:$0]  (!%p3890_p5), %s584_s22, 1024, %s586_s24, [#allocation6], %s4404_s5, %s4404_s5, %s3710_s20  }
  0x2d   : > { %s616_s18 = sshll.u32 %s3711_s1, 4  ;;  %s4443_s7 = sld [smem:[#allocation48_spill]]  ;;  %s617_s18 = int_to_ptr.vmem [resolvable:$true] %s616_s18 }
  0x2e   : > { %s614_s30 = sshll.u32 %s4442_s4, 4  ;;  %s3712_s19 = smov [#allocation11]   ;;  %s615_s30 = int_to_ptr.hbm [resolvable:$true] %s614_s30 }
  0x2f   : > { %2881 = dma.hbm_to_vmem [thread:$0]  (!%p3890_p5), %s615_s30, 128, %s617_s18, [#allocation9]  }
  0x30   : > { %s643_s21 = sshll.u32 %s3712_s19, 4  ;;  %s4444_s9 = sld [smem:[#allocation52_spill]]  ;;  %s644_s21 = int_to_ptr.vmem [resolvable:$true] %s643_s21 }
  0x31   : > { %s4406_s22 = smov 384   ;;  %s4408_s24 = smov 24  }
  0x32   : > { %s4445_s12 = sld [smem:[#allocation55_spill]]  ;;  %s732_s19 = sshll.u32 %s4391_s14, 4  ;;  %s733_s19 = int_to_ptr.hbm [resolvable:$true] %s732_s19 }
  0x33   : > { %s641_s27 = sshll.u32 %s4443_s7, 4  ;;  %s3715_s7 = smov [#allocation14]   ;;  %s642_s27 = int_to_ptr.hbm [resolvable:$true] %s641_s27 }
  0x34   : > { %2887 = dma.hbm_to_vmem [thread:$0]  (!%p3890_p5), %s642_s27, 6144, %s644_s21, [#allocation12], %s4406_s22, %s4406_s22, %s4408_s24  }
  0x35   : > { %s677_s8 = sshll.u32 %s3715_s7, 4  ;;  %s3716_s27 = smov [#allocation17]   ;;  %s678_s8 = int_to_ptr.vmem [resolvable:$true] %s677_s8 }
  0x36   : > { %s675_s0 = sshll.u32 %s4444_s9, 4  ;;  %s709_s21 = sshll.u32 %s3716_s27, 4  ;;  %s676_s0 = int_to_ptr.hbm [resolvable:$true] %s675_s0  ;;  %s710_s21 = int_to_ptr.vmem [resolvable:$true] %s709_s21 }
  0x37   : > { %2893 = dma.hbm_to_vmem [thread:$0]  (!%p3890_p5), %s676_s0, 6144, %s678_s8, [#allocation15], %s4406_s22, %s4406_s22, %s4408_s24  }
  0x38   : > { %s707_s30 = sshll.u32 %s4445_s12, 4  ;;  %s3717_s4 = smov [#allocation20]   ;;  %s708_s30 = int_to_ptr.hbm [resolvable:$true] %s707_s30 }
  0x39   : > { %2899 = dma.hbm_to_vmem [thread:$0]  (!%p3890_p5), %s708_s30, 48, %s710_s21, [#allocation18]  }
  0x3a   : > { %s734_s7 = sshll.u32 %s3717_s4, 4  ;;  %s760_s5 = sshll.u32 %s4393_s16, 4  ;;  %s735_s7 = int_to_ptr.vmem [resolvable:$true] %s734_s7  ;;  %s761_s5 = int_to_ptr.hbm [resolvable:$true] %s760_s5 }
  0x3b   : > { %s4446_s0 = smov 128   ;;  %s4447_s1 = sld [smem:[#allocation45_spill]] }
  0x3c   : > { %2905 = dma.hbm_to_vmem [thread:$0]  (!%p3890_p5), %s733_s19, 2048, %s735_s7, [#allocation21], %s4446_s0, %s4446_s0, %s3710_s20  }
  0x3d   : > { %s3718_s22 = smov [#allocation23]   ;;  %s3719_s21 = smov [#allocation7]  }
  0x3e   : > { %s762_s30 = sshll.u32 %s3718_s22, 4  ;;  %s602_s4 = sshll.u32 %s3719_s21, 4  ;;  %s763_s30 = int_to_ptr.vmem [resolvable:$true] %s762_s30  ;;  %s603_s4 = int_to_ptr.vmem [resolvable:$true] %s602_s4 }
  0x3f   : > { %2911 = dma.hbm_to_vmem [thread:$0]  (!%p3890_p5), %s761_s5, 2048, %s763_s30, [#allocation24], %s4446_s0, %s4446_s0, %s3710_s20  }
  0x40   : > { %s4448_s24 = sld [smem:[#allocation47_spill]]  ;;  %s3720_s23 = smov [#allocation10]  }
  0x41   : > { %s600_s27 = sshll.u32 %s4447_s1, 4  ;;  %s4449_s6 = sld [smem:[#allocation49_spill]]  ;;  %s601_s27 = int_to_ptr.hbm [resolvable:$true] %s600_s27 }
  0x42   : > { %2878 = dma.hbm_to_vmem [thread:$0]  (!%p3890_p5), %s601_s27, 128, %s603_s4, [#allocation6]  }
  0x43   : > { %s629_s1 = sshll.u32 %s3720_s23, 4  ;;  %s3721_s5 = smov [#allocation13]   ;;  %s630_s1 = int_to_ptr.vmem [resolvable:$true] %s629_s1 }
  0x44   : > { %s4450_s10 = sld [smem:[#allocation53_spill]]  ;;  %s4451_s4 = smov 24  }
  0x45   : > { %s4452_s11 = smov 384   ;;  %s4453_s13 = sld [smem:[#allocation56_spill]] }
  0x46   : > { %s627_s19 = sshll.u32 %s4448_s24, 4  ;;  %s657_s24 = sshll.u32 %s3721_s5, 4  ;;  %s628_s19 = int_to_ptr.hbm [resolvable:$true] %s627_s19  ;;  %s658_s24 = int_to_ptr.vmem [resolvable:$true] %s657_s24 }
  0x47   : > { %s655_s8 = sshll.u32 %s4449_s6, 4  ;;  %s3722_s23 = smov [#allocation16]   ;;  %s656_s8 = int_to_ptr.hbm [resolvable:$true] %s655_s8 }
  0x48   : > { %2884 = dma.hbm_to_vmem [thread:$0]  (!%p3890_p5), %s628_s19, 256, %s630_s1, [#allocation9], %s4446_s0, %s4446_s0, %s3710_s20  }
  0x49   : > { %2890 = dma.hbm_to_vmem [thread:$0]  (!%p3890_p5), %s656_s8, 6144, %s658_s24, [#allocation12], %s4452_s11, %s4452_s11, %s4451_s4  }
  0x4a   : > { %s689_s27 = sshll.u32 %s4450_s10, 4  ;;  %s691_s19 = sshll.u32 %s3722_s23, 4  ;;  %s690_s27 = int_to_ptr.hbm [resolvable:$true] %s689_s27  ;;  %s692_s19 = int_to_ptr.vmem [resolvable:$true] %s691_s19 }
  0x4b   : > { %s718_s22 = sshll.u32 %s4453_s13, 4  ;;  %s3723_s1 = smov [#allocation19]   ;;  %s719_s22 = int_to_ptr.hbm [resolvable:$true] %s718_s22 }
  0x4c   : > { %2896 = dma.hbm_to_vmem [thread:$0]  (!%p3890_p5), %s690_s27, 6144, %s692_s19, [#allocation15], %s4452_s11, %s4452_s11, %s4451_s4  }
  0x4d   : > { %s720_s5 = sshll.u32 %s3723_s1, 4  ;;  %s746_s24 = sshll.u32 %s4392_s15, 4  ;;  %s721_s5 = int_to_ptr.vmem [resolvable:$true] %s720_s5  ;;  %s747_s24 = int_to_ptr.hbm [resolvable:$true] %s746_s24 }
  0x4e   : > { %2902 = dma.hbm_to_vmem [thread:$0]  (!%p3890_p5), %s719_s22, 6144, %s721_s5, [#allocation18], %s4452_s11, %s4452_s11, %s4451_s4  }
  0x4f   : > { %s774_s18 = sshll.u32 %s4394_s17, 4  ;;  %s3724_s7 = smov [#allocation22]   ;;  %s775_s18 = int_to_ptr.hbm [resolvable:$true] %s774_s18 }
  0x50   : > { %s748_s23 = sshll.u32 %s3724_s7, 4  ;;  %s3725_s4 = smov [#allocation25]   ;;  %s749_s23 = int_to_ptr.vmem [resolvable:$true] %s748_s23 }
  0x51   : > { %2908 = dma.hbm_to_vmem [thread:$0]  (!%p3890_p5), %s747_s24, 2048, %s749_s23, [#allocation21], %s4446_s0, %s4446_s0, %s3710_s20  }
  0x52   : > { %s776_s11 = sshll.u32 %s3725_s4, 4  ;;  %s55_s22 = sadd.s32 1, %s3702_s3  ;;  %s777_s11 = int_to_ptr.vmem [resolvable:$true] %s776_s11 }
  0x53   : > { %2914 = dma.hbm_to_vmem [thread:$0]  (!%p3890_p5), %s775_s18, 2048, %s777_s11, [#allocation24], %s4446_s0, %s4446_s0, %s3710_s20  }
  0x54   : > { %s2747_s1 = sadd.s32 4294967294, %s3706_s28   ;;  %p56_p6 = scmp.ge.s32.totalorder %s55_s22, 8 }
  0x55   : > { %s67_s5 = sadd.s32 1, %s3694_s26  ;;  %p74_p7 = scmp.ne.s32.totalorder %s3694_s26, %s3690_s25 }
  0x56   : > { %s4495_s22 = smov (%p56_p6, %s55_s22), 0  ;;  %p75_p8 = scmp.eq.s32.totalorder %s3706_s28, 0 }
  0x57   : > { %p80_p9 = scmp.ne.s32.totalorder %s3690_s25, %s3686_s2  ;;  %s62_s30 = ssub.s32 %s3702_s3, %s4495_s22 }
  0x58   : > { %s4455_s29 = sadd.s32 4294967295, %s3706_s28   ;;  %p65_p11 = scmp.eq.s32.totalorder %s62_s30, 0 }
  0x59   : > { %p4008_p10 = scmp.eq.s32.totalorder %s4455_s29, 7  ;;  %p4014_p12 = por %p3874_p1, %p80_p9 }
  0x5a   : > { %p510_p0 = scmp.eq.s32.totalorder %s2747_s1, 7  ;;  %p76_p2 = por %p75_p8, %p74_p7 }
  0x5b   : > { %p4020_p13 = por %p4008_p10, %p74_p7  ;;  %s793_s27 = sand.u32 1, %s3694_s26  }
  0x5c   : > { %s4025_s24 = scalar_select %p65_p11, %s3694_s26, %s67_s5  }
  0x5d   : > { %p4027_p4 = por %p510_p0, %p80_p9  ;;  %s2765_s18 = sshll.u32 %s3702_s3, 3 }
  0x5e   : > { %p2937_p5 = scmp.lt.s32.totalorder %s3706_s28, 8  ;;  %s2764_s7 = sshll.u32 %s793_s27, 3 }
  0x5f   : > { %s4460_s4 = sld [smem:[#allocation43_spill]]  ;;  %s797_s29 = scalar_lea.vmem [#allocation2], %s2764_s7 }
  0x60   : > { %s806_s6 = sshll.u32 %s797_s29, 4  ;;  %p2916_p6 = pnand %p2937_p5, %p76_p2  ;;  %s807_s6 = int_to_ptr.vmem [resolvable:$true] %s806_s6 }
  0x61   : > { %s794_s1 = scalar_lea.sflag [#allocation3], %s793_s27  ;;  %s4040_s9 = sand.u32 (!%p3882_p3), 1, %s3690_s25  }
  0x62   : > { %s2767_s10 = sshll.u32 (!%p3882_p3), %s4040_s9, 3  ;;  %s818_s23 = scalar_lea.sflag (!%p3882_p3), [#allocation3], %s4040_s9 }
  0x63   : > { %815 = sbr.rel (%p3882_p3) target bundleno = 1820 (0x71c), region = 96 }
  0x65   : > { %s802_s11 = scalar_lea.hbm %s4460_s4, %s2765_s18  ;;  %s4044_s18 = scalar_lea.vmem (!%p3882_p3), [#allocation2], %s2767_s10 }
  0x66   : > { %s804_s30 = sshll.u32 %s802_s11, 4  ;;  %s805_s30 = int_to_ptr.hbm [resolvable:$true] %s804_s30 }
  0x67   : > { %2918 = dma.hbm_to_vmem [thread:$0]  (!%p2916_p6), %s805_s30, 128, %s807_s6, %s794_s1  }
  0x68   : > { %3645 = dma.done.wait (%p4014_p12), %s818_s23, 128  }
  0x69   : > { %3647 = vsyncadd (%p4014_p12), %s818_s23, 4294967168 }
  0x6a   : > { %3649 = dma.done.wait (%p3874_p1), [#allocation6], 1152  }
  0x6b   : > { %3651 = vsyncadd (%p3874_p1), [#allocation6], 4294966144 }
  0x6c   : > { %3653 = dma.done.wait (%p3874_p1), [#allocation9], 384  }
  0x6d   : > { %3655 = vsyncadd (%p3874_p1), [#allocation9], 4294966912 }
  0x6e   : > { %3657 = dma.done.wait (%p3874_p1), [#allocation12], 12288  }
  0x6f   : > { %3659 = vsyncadd (%p3874_p1), [#allocation12], 4294955008 }
  0x70   : > { %3661 = dma.done.wait (%p3874_p1), [#allocation15], 12288  }
  0x71   : > { %3663 = vsyncadd (%p3874_p1), [#allocation15], 4294955008 }
  0x72   : > { %3665 = dma.done.wait (%p3874_p1), [#allocation18], 6192  }
  0x73   : > { %3667 = vsyncadd (%p3874_p1), [#allocation18], 4294961104 }
  0x74   : > { %3669 = dma.done.wait (%p3874_p1), [#allocation21], 4096  }
  0x75   : > { %3671 = vsyncadd (%p3874_p1), [#allocation21], 4294963200 }
  0x76   : > { %3673 = dma.done.wait (%p3874_p1), [#allocation24], 4096  }
  0x77   : > { %3675 = vsyncadd (%p3874_p1), [#allocation24], 4294963200  ;;  %s4078_s6 = scalar_lea.vmem [#allocation26], %s2767_s10  ;;  %s4463_s20 = sld [smem:[#allocation40_spill]] }
  0x7d   : > { %p2783_p3 = scmp.ne.s32.totalorder %s4463_s20, 0 }
  0x7f   : > { %955 = sbr.rel (%p2783_p3) target bundleno = 136 (0x88), region = 160 }
  0x84   : > { %v956_v0 = vld [vmem:[#allocation8] sm:$0xff]  ;;  %v958_v1 = vld [vmem:[#allocation10] sm:$0xff]  ;;  %v959_v2 = vld [vmem:[#allocation10 + $0x8] sm:$0xff] }
  0x85   : > { %957 = vst [vmem:[#allocation29] sm:$0xff] %v956_v0 }
  0x86   : > { %960 = vst [vmem:[#allocation27] sm:$0xff] %v958_v1 }
  0x87   : > { %961 = vst [vmem:[#allocation27 + $0x8] sm:$0xff] %v959_v2 }
  0x88 PF: > { %v1056_v3 = vld [vmem:[#allocation13 + $0x170] sm:$0xff]  ;;  %v1057_v4 = vld [vmem:[#allocation13 + $0x178] sm:$0xff]  ;;  %v1007_v5 = vld [vmem:[#allocation11 + $0x168] sm:$0xff]  ;;  %s4464_s19 = sld [smem:[#allocation50_spill]]  ;;  %s3726_s4 = smov [#allocation27]  }
  0x89   : > { %1303 = vmatpush.msra.mxu1 %v1056_v3  ;;  %1323 = vmatpush.msra.mxu2 %v1057_v4  ;;  %v1053_v6 = vld [vmem:[#allocation13 + $0x158] sm:$0xff]  ;;  %v1054_v7 = vld [vmem:[#allocation13 + $0x160] sm:$0xff]  ;;  %v1004_v8 = vld [vmem:[#allocation11 + $0x150] sm:$0xff]  ;;  %s4465_s30 = sld [smem:[#allocation51_spill]]  ;;  %s2478_s11 = sshll.u32 %s3726_s4, 4  ;;  %s2479_s11 = int_to_ptr.vmem [resolvable:$true] %s2478_s11 }
  0x8a   : > { %1343 = vmatpush.msra.mxu3 %v1007_v5  ;;  %v1055_v9 = vld [vmem:[#allocation13 + $0x168] sm:$0xff]  ;;  %v1050_v10 = vld [vmem:[#allocation13 + $0x140] sm:$0xff]  ;;  %v1001_v12 = vld [vmem:[#allocation11 + $0x138] sm:$0xff]  ;;  %s4466_s5 = sld [smem:[#allocation54_spill]]  ;;  %s3727_s29 = smov 128  }
  0x8b   : > { %v1051_v11 = vld [vmem:[#allocation13 + $0x148] sm:$0xff]  ;;  %1304 = vmatpush.msra.mxu1 %v1053_v6  ;;  %1324 = vmatpush.msra.mxu2 %v1054_v7  ;;  %v1052_v13 = vld [vmem:[#allocation13 + $0x150] sm:$0xff]  ;;  %v998_v16 = vld [vmem:[#allocation11 + $0x120] sm:$0xff]  ;;  %s4484_s27 = sld [smem:[#allocation57_spill]]  ;;  %s3728_s1 = smov 8  }
  0x8c   : > { %1344 = vmatpush.msra.mxu3 %v1004_v8  ;;  %1283 = vmatpush.msra.mxu0 %v1055_v9  ;;  %v1047_v14 = vld [vmem:[#allocation13 + $0x128] sm:$0xff]  ;;  %v1048_v15 = vld [vmem:[#allocation13 + $0x130] sm:$0xff]  ;;  %v1049_v17 = vld [vmem:[#allocation13 + $0x138] sm:$0xff]  ;;  %s4485_s7 = sld [smem:[#allocation59_spill]] }
  0x8d   : > { %1305 = vmatpush.msra.mxu1 %v1050_v10  ;;  %1325 = vmatpush.msra.mxu2 %v1051_v11  ;;  %v1044_v18 = vld [vmem:[#allocation13 + $0x110] sm:$0xff]  ;;  %v1045_v19 = vld [vmem:[#allocation13 + $0x118] sm:$0xff]  ;;  %v995_v20 = vld [vmem:[#allocation11 + $0x108] sm:$0xff]  ;;  %s4487_s12 = sld [smem:[#allocation60_spill]] }
  0x8e   : > { %1345 = vmatpush.msra.mxu3 %v1001_v12  ;;  %1284 = vmatpush.msra.mxu0 %v1052_v13  ;;  %v1046_v21 = vld [vmem:[#allocation13 + $0x120] sm:$0xff]  ;;  %v1041_v22 = vld [vmem:[#allocation13 + $0xf8] sm:$0xff]  ;;  %v992_v24 = vld [vmem:[#allocation11 + $0xf0] sm:$0xff]  ;;  %s4488_s13 = sld [smem:[#allocation58_spill]] }
  0x8f   : > { %1306 = vmatpush.msra.mxu1 %v1047_v14  ;;  %1326 = vmatpush.msra.mxu2 %v1048_v15  ;;  %v1042_v23 = vld [vmem:[#allocation13 + $0x100] sm:$0xff]  ;;  %v1043_v25 = vld [vmem:[#allocation13 + $0x108] sm:$0xff]  ;;  %v989_v28 = vld [vmem:[#allocation11 + $0xd8] sm:$0xff] }
  0x90   : > { %1346 = vmatpush.msra.mxu3 %v998_v16  ;;  %1285 = vmatpush.msra.mxu0 %v1049_v17  ;;  %v1038_v26 = vld [vmem:[#allocation13 + $0xe0] sm:$0xff]  ;;  %v1039_v27 = vld [vmem:[#allocation13 + $0xe8] sm:$0xff]  ;;  %v1040_v29 = vld [vmem:[#allocation13 + $0xf0] sm:$0xff] }
  0x91   : > { %1307 = vmatpush.msra.mxu1 %v1044_v18  ;;  %1327 = vmatpush.msra.mxu2 %v1045_v19  ;;  %v1035_v30 = vld [vmem:[#allocation13 + $0xc8] sm:$0xff]  ;;  %v1036_v31 = vld [vmem:[#allocation13 + $0xd0] sm:$0xff]  ;;  %v986_v32 = vld [vmem:[#allocation11 + $0xc0] sm:$0xff] }
  0x92   : > { %1347 = vmatpush.msra.mxu3 %v995_v20  ;;  %1286 = vmatpush.msra.mxu0 %v1046_v21  ;;  %v1037_v33 = vld [vmem:[#allocation13 + $0xd8] sm:$0xff]  ;;  %v1032_v34 = vld [vmem:[#allocation13 + $0xb0] sm:$0xff]  ;;  %v983_v36 = vld [vmem:[#allocation11 + $0xa8] sm:$0xff] }
  0x93   : > { %1308 = vmatpush.msra.mxu1 %v1041_v22  ;;  %1328 = vmatpush.msra.mxu2 %v1042_v23  ;;  %v1033_v35 = vld [vmem:[#allocation13 + $0xb8] sm:$0xff]  ;;  %v1034_v37 = vld [vmem:[#allocation13 + $0xc0] sm:$0xff]  ;;  %v980_v40 = vld [vmem:[#allocation11 + $0x90] sm:$0xff]  ;;  %s2497_s20 = sshll.u32 %s4487_s12, 4  ;;  %s2452_s12 = scalar_lea.sflag [#allocation4], %s4040_s9  ;;  %s2498_s20 = int_to_ptr.hbm [resolvable:$true] %s2497_s20 }
  0x94   : > { %1348 = vmatpush.msra.mxu3 %v992_v24  ;;  %1287 = vmatpush.msra.mxu0 %v1043_v25  ;;  %v1029_v38 = vld [vmem:[#allocation13 + $0x98] sm:$0xff]  ;;  %v1030_v39 = vld [vmem:[#allocation13 + $0xa0] sm:$0xff]  ;;  %v1031_v41 = vld [vmem:[#allocation13 + $0xa8] sm:$0xff] }
  0x95   : > { %1309 = vmatpush.msra.mxu1 %v1038_v26  ;;  %1329 = vmatpush.msra.mxu2 %v1039_v27  ;;  %v1026_v42 = vld [vmem:[#allocation13 + $0x80] sm:$0xff]  ;;  %v1027_v43 = vld [vmem:[#allocation13 + $0x88] sm:$0xff]  ;;  %v977_v44 = vld [vmem:[#allocation11 + $0x78] sm:$0xff] }
  0x96   : > { %1349 = vmatpush.msra.mxu3 %v989_v28  ;;  %1288 = vmatpush.msra.mxu0 %v1040_v29  ;;  %v1028_v45 = vld [vmem:[#allocation13 + $0x90] sm:$0xff]  ;;  %v1023_v46 = vld [vmem:[#allocation13 + $0x68] sm:$0xff]  ;;  %v974_v48 = vld [vmem:[#allocation11 + $0x60] sm:$0xff] }
  0x97   : > { %1310 = vmatpush.msra.mxu1 %v1035_v30  ;;  %1330 = vmatpush.msra.mxu2 %v1036_v31  ;;  %v1024_v47 = vld [vmem:[#allocation13 + $0x70] sm:$0xff]  ;;  %v1025_v49 = vld [vmem:[#allocation13 + $0x78] sm:$0xff]  ;;  %v971_v52 = vld [vmem:[#allocation11 + $0x48] sm:$0xff] }
  0x98   : > { %1350 = vmatpush.msra.mxu3 %v986_v32  ;;  %1289 = vmatpush.msra.mxu0 %v1037_v33  ;;  %v1020_v50 = vld [vmem:[#allocation13 + $0x50] sm:$0xff]  ;;  %v1021_v51 = vld [vmem:[#allocation13 + $0x58] sm:$0xff]  ;;  %v1022_v53 = vld [vmem:[#allocation13 + $0x60] sm:$0xff] }
  0x99   : > { %1311 = vmatpush.msra.mxu1 %v1032_v34  ;;  %1331 = vmatpush.msra.mxu2 %v1033_v35  ;;  %v1017_v54 = vld [vmem:[#allocation13 + $0x38] sm:$0xff]  ;;  %v1018_v55 = vld [vmem:[#allocation13 + $0x40] sm:$0xff]  ;;  %v968_v56 = vld [vmem:[#allocation11 + $0x30] sm:$0xff] }
  0x9a   : > { %1351 = vmatpush.msra.mxu3 %v983_v36  ;;  %1290 = vmatpush.msra.mxu0 %v1034_v37  ;;  %v1019_v57 = vld [vmem:[#allocation13 + $0x48] sm:$0xff]  ;;  %v1014_v58 = vld [vmem:[#allocation13 + $0x20] sm:$0xff]  ;;  %v965_v60 = vld [vmem:[#allocation11 + $0x18] sm:$0xff] }
  0x9b   : > { %1312 = vmatpush.msra.mxu1 %v1029_v38  ;;  %1332 = vmatpush.msra.mxu2 %v1030_v39  ;;  %v1015_v59 = vld [vmem:[#allocation13 + $0x28] sm:$0xff]  ;;  %v1016_v61 = vld [vmem:[#allocation13 + $0x30] sm:$0xff]  ;;  %v962_v0 = vld [vmem:[#allocation11] sm:$0xff] }
  0x9c   : > { %1352 = vmatpush.msra.mxu3 %v980_v40  ;;  %1291 = vmatpush.msra.mxu0 %v1031_v41  ;;  %v1011_v62 = vld [vmem:[#allocation13 + $0x8] sm:$0xff]  ;;  %v1012_v63 = vld [vmem:[#allocation13 + $0x10] sm:$0xff]  ;;  %v1009_v1 = vld [vmem:[#allocation11 + $0x178] sm:$0xff] }
  0x9d   : > { %1313 = vmatpush.msra.mxu1 %v1026_v42  ;;  %1333 = vmatpush.msra.mxu2 %v1027_v43  ;;  %v1105_v2 = vld [vmem:[#allocation14 + $0x168] sm:$0xff]  ;;  %v1106_v3 = vld [vmem:[#allocation14 + $0x170] sm:$0xff]  ;;  %v1013_v4 = vld [vmem:[#allocation13 + $0x18] sm:$0xff] }
  0x9e   : > { %1353 = vmatpush.msra.mxu3 %v977_v44  ;;  %1292 = vmatpush.msra.mxu0 %v1028_v45  ;;  %v1006_v5 = vld [vmem:[#allocation11 + $0x160] sm:$0xff]  ;;  %v1102_v6 = vld [vmem:[#allocation14 + $0x150] sm:$0xff]  ;;  %v1103_v7 = vld [vmem:[#allocation14 + $0x158] sm:$0xff] }
  0x9f   : > { %1314 = vmatpush.msra.mxu1 %v1023_v46  ;;  %1334 = vmatpush.msra.mxu2 %v1024_v47  ;;  %v1010_v8 = vld [vmem:[#allocation13] sm:$0xff]  ;;  %v1003_v9 = vld [vmem:[#allocation11 + $0x148] sm:$0xff]  ;;  %v1008_v10 = vld [vmem:[#allocation11 + $0x170] sm:$0xff] }
  0xa0   : > { %1354 = vmatpush.msra.mxu3 %v974_v48  ;;  %1293 = vmatpush.msra.mxu0 %v1025_v49  ;;  %v1099_v11 = vld [vmem:[#allocation14 + $0x138] sm:$0xff]  ;;  %v1100_v12 = vld [vmem:[#allocation14 + $0x140] sm:$0xff]  ;;  %v1000_v13 = vld [vmem:[#allocation11 + $0x130] sm:$0xff] }
  0xa1   : > { %1315 = vmatpush.msra.mxu1 %v1020_v50  ;;  %1335 = vmatpush.msra.mxu2 %v1021_v51  ;;  %v1005_v14 = vld [vmem:[#allocation11 + $0x158] sm:$0xff]  ;;  %v1096_v15 = vld [vmem:[#allocation14 + $0x120] sm:$0xff]  ;;  %v1097_v16 = vld [vmem:[#allocation14 + $0x128] sm:$0xff] }
  0xa2   : > { %1355 = vmatpush.msra.mxu3 %v971_v52  ;;  %1294 = vmatpush.msra.mxu0 %v1022_v53  ;;  %v997_v17 = vld [vmem:[#allocation11 + $0x118] sm:$0xff]  ;;  %v1002_v18 = vld [vmem:[#allocation11 + $0x140] sm:$0xff]  ;;  %v1093_v19 = vld [vmem:[#allocation14 + $0x108] sm:$0xff] }
  0xa3   : > { %1316 = vmatpush.msra.mxu1 %v1017_v54  ;;  %1336 = vmatpush.msra.mxu2 %v1018_v55  ;;  %v1094_v20 = vld [vmem:[#allocation14 + $0x110] sm:$0xff]  ;;  %v994_v21 = vld [vmem:[#allocation11 + $0x100] sm:$0xff]  ;;  %v999_v22 = vld [vmem:[#allocation11 + $0x128] sm:$0xff] }
  0xa4   : > { %1356 = vmatpush.msra.mxu3 %v968_v56  ;;  %1295 = vmatpush.msra.mxu0 %v1019_v57  ;;  %v1090_v23 = vld [vmem:[#allocation14 + $0xf0] sm:$0xff]  ;;  %v1091_v24 = vld [vmem:[#allocation14 + $0xf8] sm:$0xff]  ;;  %v991_v25 = vld [vmem:[#allocation11 + $0xe8] sm:$0xff] }
  0xa5   : > { %1317 = vmatpush.msra.mxu1 %v1014_v58  ;;  %1337 = vmatpush.msra.mxu2 %v1015_v59  ;;  %v996_v26 = vld [vmem:[#allocation11 + $0x110] sm:$0xff]  ;;  %v1087_v27 = vld [vmem:[#allocation14 + $0xd8] sm:$0xff]  ;;  %v1088_v28 = vld [vmem:[#allocation14 + $0xe0] sm:$0xff] }
  0xa6   : > { %1357 = vmatpush.msra.mxu3 %v965_v60  ;;  %1296 = vmatpush.msra.mxu0 %v1016_v61  ;;  %v988_v29 = vld [vmem:[#allocation11 + $0xd0] sm:$0xff]  ;;  %v993_v30 = vld [vmem:[#allocation11 + $0xf8] sm:$0xff]  ;;  %v1084_v31 = vld [vmem:[#allocation14 + $0xc0] sm:$0xff] }
  0xa7   : > { %1318 = vmatpush.msra.mxu1 %v1011_v62  ;;  %1338 = vmatpush.msra.mxu2 %v1012_v63  ;;  %v1085_v32 = vld [vmem:[#allocation14 + $0xc8] sm:$0xff]  ;;  %v985_v33 = vld [vmem:[#allocation11 + $0xb8] sm:$0xff]  ;;  %v990_v34 = vld [vmem:[#allocation11 + $0xe0] sm:$0xff] }
  0xa8   : > { %1358 = vmatpush.msra.mxu3 %v962_v0  ;;  %1297 = vmatpush.msra.mxu0 %v1013_v4  ;;  %v1081_v35 = vld [vmem:[#allocation14 + $0xa8] sm:$0xff]  ;;  %v1082_v36 = vld [vmem:[#allocation14 + $0xb0] sm:$0xff]  ;;  %v982_v37 = vld [vmem:[#allocation11 + $0xa0] sm:$0xff] }
  0xa9   : > { %1383 = vmatpush.msrb.mxu1 %v1009_v1  ;;  %1420 = vmatpush.msrb.mxu2 %v1105_v2  ;;  %v987_v38 = vld [vmem:[#allocation11 + $0xc8] sm:$0xff]  ;;  %v1078_v39 = vld [vmem:[#allocation14 + $0x90] sm:$0xff]  ;;  %v1079_v40 = vld [vmem:[#allocation14 + $0x98] sm:$0xff] }
  0xaa   : > { %1440 = vmatpush.msrb.mxu3 %v1106_v3  ;;  %1298 = vmatpush.msra.mxu0 %v1010_v8  ;;  %v979_v41 = vld [vmem:[#allocation11 + $0x88] sm:$0xff]  ;;  %v984_v42 = vld [vmem:[#allocation11 + $0xb0] sm:$0xff]  ;;  %v1075_v43 = vld [vmem:[#allocation14 + $0x78] sm:$0xff] }
  0xab   : > { %1384 = vmatpush.msrb.mxu1 %v1006_v5  ;;  %1421 = vmatpush.msrb.mxu2 %v1102_v6  ;;  %v1076_v44 = vld [vmem:[#allocation14 + $0x80] sm:$0xff]  ;;  %v976_v45 = vld [vmem:[#allocation11 + $0x70] sm:$0xff]  ;;  %v981_v46 = vld [vmem:[#allocation11 + $0x98] sm:$0xff] }
  0xac   : > { %1441 = vmatpush.msrb.mxu3 %v1103_v7  ;;  %1363 = vmatpush.msrb.mxu0 %v1008_v10  ;;  %v1072_v47 = vld [vmem:[#allocation14 + $0x60] sm:$0xff]  ;;  %v1073_v48 = vld [vmem:[#allocation14 + $0x68] sm:$0xff]  ;;  %v1280_v50 = vld [vmem:[%s4044_s18] sm:$0xff]  ;;  %s3612_s18 = scalar_lea.hbm %s4488_s13, 64 }
  0xad   : > { %1385 = vmatpush.msrb.mxu1 %v1003_v9  ;;  %1422 = vmatpush.msrb.mxu2 %v1099_v11  ;;  %v1281_v49 = vld [vmem:[#allocation29] sm:$0xff]  ;;  %v973_v52 = vld [vmem:[#allocation11 + $0x58] sm:$0xff]  ;;  %v1070_v54 = vld [vmem:[#allocation14 + $0x50] sm:$0xff] }
  0xae   : > { %1442 = vmatpush.msrb.mxu3 %v1100_v12  ;;  %1364 = vmatpush.msrb.mxu0 %v1005_v14  ;;  %v978_v51 = vld [vmem:[#allocation11 + $0x80] sm:$0xff]  ;;  %v1069_v53 = vld [vmem:[#allocation14 + $0x48] sm:$0xff]  ;;  %v1066_v57 = vld [vmem:[#allocation14 + $0x30] sm:$0xff] }
  0xaf   : > { %1386 = vmatpush.msrb.mxu1 %v1000_v13  ;;  %1423 = vmatpush.msrb.mxu2 %v1096_v15  ;;  %v975_v55 = vld [vmem:[#allocation11 + $0x68] sm:$0xff]  ;;  %v970_v56 = vld [vmem:[#allocation11 + $0x40] sm:$0xff]  ;;  %v1067_v58 = vld [vmem:[#allocation14 + $0x38] sm:$0xff] }
  0xb0   : > { %1443 = vmatpush.msrb.mxu3 %v1097_v16  ;;  %1365 = vmatpush.msrb.mxu0 %v1002_v18  ;;  %v967_v59 = vld [vmem:[#allocation11 + $0x28] sm:$0xff]  ;;  %v972_v60 = vld [vmem:[#allocation11 + $0x50] sm:$0xff]  ;;  %v1063_v61 = vld [vmem:[#allocation14 + $0x18] sm:$0xff] }
  0xb1   : > { %1387 = vmatpush.msrb.mxu1 %v997_v17  ;;  %1424 = vmatpush.msrb.mxu2 %v1093_v19  ;;  %v1064_v62 = vld [vmem:[#allocation14 + $0x20] sm:$0xff]  ;;  %v964_v63 = vld [vmem:[#allocation11 + $0x10] sm:$0xff]  ;;  %v969_v0 = vld [vmem:[#allocation11 + $0x38] sm:$0xff] }
  0xb2   : > { %1444 = vmatpush.msrb.mxu3 %v1094_v20  ;;  %1366 = vmatpush.msrb.mxu0 %v999_v22  ;;  %v1060_v1 = vld [vmem:[#allocation14] sm:$0xff]  ;;  %v1061_v2 = vld [vmem:[#allocation14 + $0x8] sm:$0xff]  ;;  %v4082_v3 = vld [vmem:[#allocation27] sm:$0xff] }
  0xb3   : > { %1388 = vmatpush.msrb.mxu1 %v994_v21  ;;  %1425 = vmatpush.msrb.mxu2 %v1090_v23  ;;  %v966_v4 = vld [vmem:[#allocation11 + $0x20] sm:$0xff]  ;;  %v963_v5 = vld [vmem:[#allocation11 + $0x8] sm:$0xff]  ;;  %v1107_v6 = vld [vmem:[#allocation14 + $0x178] sm:$0xff] }
  0xb4   : > { %1445 = vmatpush.msrb.mxu3 %v1091_v24  ;;  %1367 = vmatpush.msrb.mxu0 %v996_v26  ;;  %v1104_v7 = vld [vmem:[#allocation14 + $0x160] sm:$0xff]  ;;  %v1101_v8 = vld [vmem:[#allocation14 + $0x148] sm:$0xff]  ;;  %v1098_v9 = vld [vmem:[#allocation14 + $0x130] sm:$0xff] }
  0xb5   : > { %1389 = vmatpush.msrb.mxu1 %v991_v25  ;;  %1426 = vmatpush.msrb.mxu2 %v1087_v27  ;;  %v1095_v10 = vld [vmem:[#allocation14 + $0x118] sm:$0xff]  ;;  %v1092_v11 = vld [vmem:[#allocation14 + $0x100] sm:$0xff]  ;;  %v1089_v12 = vld [vmem:[#allocation14 + $0xe8] sm:$0xff] }
  0xb6   : > { %1446 = vmatpush.msrb.mxu3 %v1088_v28  ;;  %1368 = vmatpush.msrb.mxu0 %v993_v30  ;;  %v1086_v13 = vld [vmem:[#allocation14 + $0xd0] sm:$0xff]  ;;  %v1083_v14 = vld [vmem:[#allocation14 + $0xb8] sm:$0xff]  ;;  %v1080_v15 = vld [vmem:[#allocation14 + $0xa0] sm:$0xff] }
  0xb7   : > { %1390 = vmatpush.msrb.mxu1 %v988_v29  ;;  %1427 = vmatpush.msrb.mxu2 %v1084_v31  ;;  %v1077_v16 = vld [vmem:[#allocation14 + $0x88] sm:$0xff]  ;;  %v1074_v17 = vld [vmem:[#allocation14 + $0x70] sm:$0xff]  ;;  %v1071_v18 = vld [vmem:[#allocation14 + $0x58] sm:$0xff] }
  0xb8   : > { %1447 = vmatpush.msrb.mxu3 %v1085_v32  ;;  %1369 = vmatpush.msrb.mxu0 %v990_v34  ;;  %v1068_v19 = vld [vmem:[#allocation14 + $0x40] sm:$0xff]  ;;  %v1065_v20 = vld [vmem:[#allocation14 + $0x28] sm:$0xff]  ;;  %v1062_v21 = vld [vmem:[#allocation14 + $0x10] sm:$0xff] }
  0xb9   : > { %1391 = vmatpush.msrb.mxu1 %v985_v33  ;;  %1428 = vmatpush.msrb.mxu2 %v1081_v35  ;;  %v1153_v22 = vld [vmem:[#allocation16 + $0x168] sm:$0xff]  ;;  %v1150_v23 = vld [vmem:[#allocation16 + $0x150] sm:$0xff]  ;;  %v1147_v24 = vld [vmem:[#allocation16 + $0x138] sm:$0xff] }
  0xba   : > { %1448 = vmatpush.msrb.mxu3 %v1082_v36  ;;  %1370 = vmatpush.msrb.mxu0 %v987_v38  ;;  %v1144_v25 = vld [vmem:[#allocation16 + $0x120] sm:$0xff]  ;;  %v1141_v26 = vld [vmem:[#allocation16 + $0x108] sm:$0xff]  ;;  %v1138_v27 = vld [vmem:[#allocation16 + $0xf0] sm:$0xff] }
  0xbb   : > { %1392 = vmatpush.msrb.mxu1 %v982_v37  ;;  %1429 = vmatpush.msrb.mxu2 %v1078_v39  ;;  %v1135_v28 = vld [vmem:[#allocation16 + $0xd8] sm:$0xff]  ;;  %v1132_v29 = vld [vmem:[#allocation16 + $0xc0] sm:$0xff]  ;;  %v1129_v30 = vld [vmem:[#allocation16 + $0xa8] sm:$0xff] }
  0xbc   : > { %1449 = vmatpush.msrb.mxu3 %v1079_v40  ;;  %1371 = vmatpush.msrb.mxu0 %v984_v42  ;;  %v1154_v31 = vld [vmem:[#allocation16 + $0x170] sm:$0xff]  ;;  %v1151_v33 = vld [vmem:[#allocation16 + $0x158] sm:$0xff]  ;;  %v1148_v35 = vld [vmem:[#allocation16 + $0x140] sm:$0xff] }
  0xbd   : > { %1393 = vmatpush.msrb.mxu1 %v979_v41  ;;  %1430 = vmatpush.msrb.mxu2 %v1075_v43  ;;  %v1126_v32 = vld [vmem:[#allocation16 + $0x90] sm:$0xff]  ;;  %v1123_v34 = vld [vmem:[#allocation16 + $0x78] sm:$0xff]  ;;  %v1120_v36 = vld [vmem:[#allocation16 + $0x60] sm:$0xff] }
  0xbe   : > { %1450 = vmatpush.msrb.mxu3 %v1076_v44  ;;  %1372 = vmatpush.msrb.mxu0 %v981_v46  ;;  %v1145_v37 = vld [vmem:[#allocation16 + $0x128] sm:$0xff]  ;;  %v1155_v38 = vld [vmem:[#allocation16 + $0x178] sm:$0xff]  ;;  %v1142_v41 = vld [vmem:[#allocation16 + $0x110] sm:$0xff] }
  0xbf   : > { %1394 = vmatpush.msrb.mxu1 %v976_v45  ;;  %1431 = vmatpush.msrb.mxu2 %v1072_v47  ;;  %v1203_v39 = vld [vmem:[#allocation19 + $0x168] sm:$0xff]  ;;  %v1152_v42 = vld [vmem:[#allocation16 + $0x160] sm:$0xff]  ;;  %v1200_v43 = vld [vmem:[#allocation19 + $0x150] sm:$0xff] }
  0xc0   : > { %1451 = vmatpush.msrb.mxu3 %v1073_v48  ;;  %1319 = vmatmul.f32.vlgmr.msra.gmra.mxu1 %v1281_v49  ;;  %v1117_v40 = vld [vmem:[#allocation16 + $0x48] sm:$0xff]  ;;  %v1114_v44 = vld [vmem:[#allocation16 + $0x30] sm:$0xff]  ;;  %v1139_v45 = vld [vmem:[#allocation16 + $0xf8] sm:$0xff] }
  0xc1   : > { %1339 = vmatmul.f32.vlgmr.msra.gmra.mxu2 %v1281_v49  ;;  %1359 = vmatmul.f32.vlgmr.msra.gmra.mxu3 %v1280_v50  ;;  %v1149_v47 = vld [vmem:[#allocation16 + $0x148] sm:$0xff]  ;;  %v1197_v48 = vld [vmem:[#allocation19 + $0x138] sm:$0xff] }
  0xc2   : > { %1373 = vmatpush.msrb.mxu0 %v978_v51  ;;  %1395 = vmatpush.msrb.mxu1 %v973_v52  ;;  %v1111_v51 = vld [vmem:[#allocation16 + $0x18] sm:$0xff]  ;;  %v1136_v52 = vld [vmem:[#allocation16 + $0xe0] sm:$0xff] }
  0xc3   : > { %1432 = vmatpush.msrb.mxu2 %v1069_v53  ;;  %1452 = vmatpush.msrb.mxu3 %v1070_v54  ;;  %v1146_v53 = vld [vmem:[#allocation16 + $0x130] sm:$0xff]  ;;  %v1194_v54 = vld [vmem:[#allocation19 + $0x120] sm:$0xff] }
  0xc4   : > { %1374 = vmatpush.msrb.mxu0 %v975_v55  ;;  %1396 = vmatpush.msrb.mxu1 %v970_v56  ;;  %v4092_v55 = vld [vmem:[%s4464_s19] sm:$0x7]  ;;  %s2480_s19 = sshll.u32 %s4485_s7, 4  ;;  %s2481_s19 = int_to_ptr.hbm [resolvable:$true] %s2480_s19 }
  0xc5   : > { %1433 = vmatpush.msrb.mxu2 %v1066_v57  ;;  %1453 = vmatpush.msrb.mxu3 %v1067_v58  ;;  %v4097_v56 = vld [vmem:[%s4465_s30] sm:$0x7]  ;;  %v1108_v57 = vld [vmem:[#allocation16] sm:$0xff]  ;;  %v1133_v58 = vld [vmem:[#allocation16 + $0xc8] sm:$0xff]  ;;  %s4486_s30 = sld [smem:[#allocation40_spill]] }
  0xc6   : > { %1299 = vmatmul.f32.vlgmr.msra.gmra.mxu0 %v1281_v49  ;;  %1397 = vmatpush.msrb.mxu1 %v967_v59  ;;  %v1143_v59 = vld [vmem:[#allocation16 + $0x118] sm:$0xff] }
  0xc7   : > { %1375 = vmatpush.msrb.mxu0 %v972_v60  ;;  %1434 = vmatpush.msrb.mxu2 %v1063_v61  ;;  %v1191_v60 = vld [vmem:[#allocation19 + $0x108] sm:$0xff]  ;;  %v1204_v61 = vld [vmem:[#allocation19 + $0x170] sm:$0xff] }
  0xc8   : > { %1454 = vmatpush.msrb.mxu3 %v1064_v62  ;;  %1398 = vmatpush.msrb.mxu1 %v964_v63  ;;  %v1130_v62 = vld [vmem:[#allocation16 + $0xb0] sm:$0xff]  ;;  %v1140_v63 = vld [vmem:[#allocation16 + $0x100] sm:$0xff] }
  0xc9   : > { %1376 = vmatpush.msrb.mxu0 %v969_v0  ;;  %1435 = vmatpush.msrb.mxu2 %v1060_v1  ;;  %v1188_v0 = vld [vmem:[#allocation19 + $0xf0] sm:$0xff] }
  0xca   : > { %1455 = vmatpush.msrb.mxu3 %v1061_v2  ;;  %1399 = vmatmul.f32.vlgmr.msrb.gmra.mxu1 %v1280_v50  ;;  %v1404_v2 = vperm.slane %v4092_v55, 0 }
  0xcb   : > { %1436 = vmatmul.f32.vlgmr.msrb.gmra.mxu2 %v4082_v3  ;;  %1456 = vmatmul.f32.vlgmr.msrb.gmra.mxu3 %v4082_v3  ;;  %s2797_s10 = sshll.u32 %s4486_s30, 3 }
  0xcc   : > { %1377 = vmatpush.msrb.mxu0 %v966_v4  ;;  %1537 = vmatpush.msra.mxu1 %v1153_v22  ;;  %v1201_v4 = vld [vmem:[#allocation19 + $0x158] sm:$0xff]  ;;  %v1121_v22 = vld [vmem:[#allocation16 + $0x68] sm:$0xff] }
  0xcd   : > { %1557 = vmatpush.msra.mxu2 %v1154_v31  ;;  %1577 = vmatpush.msra.mxu3 %v1155_v38  ;;  %v1125_v38 = vld [vmem:[#allocation16 + $0x88] sm:$0xff] }
  0xce   : > { %1378 = vmatpush.msrb.mxu0 %v963_v5  ;;  %1538 = vmatpush.msra.mxu1 %v1150_v23  ;;  %v1127_v5 = vld [vmem:[#allocation16 + $0x98] sm:$0xff] }
  0xcf   : > { %1379 = vmatmul.f32.vlgmr.msrb.gmra.mxu0 %v1280_v50  ;;  %1558 = vmatpush.msra.mxu2 %v1151_v33  ;;  %v1176_v33 = vld [vmem:[#allocation19 + $0x90] sm:$0xff] }
  0xd0   : > { %1460 = vmatpush.msra.mxu0 %v1107_v6  ;;  %1539 = vmatpush.msra.mxu1 %v1147_v24  ;;  %v1137_v6 = vld [vmem:[#allocation16 + $0xe8] sm:$0xff] }
  0xd1   : > { %1559 = vmatpush.msra.mxu2 %v1148_v35  ;;  %1578 = vmatpush.msra.mxu3 %v1152_v42  ;;  %v1115_v35 = vld [vmem:[#allocation16 + $0x38] sm:$0xff]  ;;  %v1122_v42 = vld [vmem:[#allocation16 + $0x70] sm:$0xff] }
  0xd2   : > { %1461 = vmatpush.msra.mxu0 %v1104_v7  ;;  %1540 = vmatpush.msra.mxu1 %v1144_v25  ;;  %v1185_v7 = vld [vmem:[#allocation19 + $0xd8] sm:$0xff] }
  0xd3   : > { %1560 = vmatpush.msra.mxu2 %v1145_v37  ;;  %1579 = vmatpush.msra.mxu3 %v1149_v47  ;;  %v1167_v47 = vld [vmem:[#allocation19 + $0x48] sm:$0xff] }
  0xd4   : > { %1462 = vmatpush.msra.mxu0 %v1101_v8  ;;  %1541 = vmatpush.msra.mxu1 %v1141_v26  ;;  %v1198_v8 = vld [vmem:[#allocation19 + $0x140] sm:$0xff]  ;;  %v1131_v26 = vld [vmem:[#allocation16 + $0xb8] sm:$0xff] }
  0xd5   : > { %1561 = vmatpush.msra.mxu2 %v1142_v41  ;;  %1580 = vmatpush.msra.mxu3 %v1146_v53  ;;  %v1112_v41 = vld [vmem:[#allocation16 + $0x20] sm:$0xff] }
  0xd6   : > { %1463 = vmatpush.msra.mxu0 %v1098_v9  ;;  %1542 = vmatpush.msra.mxu1 %v1138_v27  ;;  %v1405_v9 = vperm.slane %v4092_v55, 1  ;;  %v1179_v27 = vld [vmem:[#allocation19 + $0xa8] sm:$0xff]  ;;  %v1177_v53 = vld [vmem:[#allocation19 + $0x98] sm:$0xff] }
  0xd7   : > { %1562 = vmatpush.msra.mxu2 %v1139_v45  ;;  %1581 = vmatpush.msra.mxu3 %v1143_v59  ;;  %v1109_v45 = vld [vmem:[#allocation16 + $0x8] sm:$0xff] }
  0xd8   : > { %1464 = vmatpush.msra.mxu0 %v1095_v10  ;;  %1543 = vmatpush.msra.mxu1 %v1135_v28  ;;  %v1414_v10 = vperm.slane %v4097_v56, 0  ;;  %v1192_v28 = vld [vmem:[#allocation19 + $0x110] sm:$0xff]  ;;  %v1174_v59 = vld [vmem:[#allocation19 + $0x80] sm:$0xff] }
  0xd9   : > { %1563 = vmatpush.msra.mxu2 %v1136_v52  ;;  %1582 = vmatpush.msra.mxu3 %v1140_v63  ;;  %v1164_v52 = vld [vmem:[#allocation19 + $0x30] sm:$0xff]  ;;  %v1158_v63 = vld [vmem:[#allocation19] sm:$0xff] }
  0xda   : > { %1465 = vmatpush.msra.mxu0 %v1092_v11  ;;  %1544 = vmatpush.msra.mxu1 %v1132_v29  ;;  %v1415_v11 = vperm.slane %v4097_v56, 1  ;;  %v1118_v29 = vld [vmem:[#allocation16 + $0x50] sm:$0xff] }
  0xdb   : > { %1564 = vmatpush.msra.mxu2 %v1133_v58  ;;  %1583 = vmatpush.msra.mxu3 %v1137_v6  ;;  %v1161_v58 = vld [vmem:[#allocation19 + $0x18] sm:$0xff] }
  0xdc   : > { %1466 = vmatpush.msra.mxu0 %v1089_v12  ;;  %1545 = vmatpush.msra.mxu1 %v1129_v30  ;;  %v4105_v6 = vld [vmem:[#allocation27 + $0x8] sm:$0xff] }
  0xdd   : > { %1565 = vmatpush.msra.mxu2 %v1130_v62  ;;  %v1110_v62 = vld [vmem:[#allocation16 + $0x10] sm:$0xff] }
  0xde   : > { %1467 = vmatpush.msra.mxu0 %v1086_v13  ;;  %1546 = vmatpush.msra.mxu1 %v1126_v32  ;;  %v1128_v32 = vld [vmem:[#allocation16 + $0xa0] sm:$0xff] }
  0xdf   : > { %1566 = vmatpush.msra.mxu2 %v1127_v5 }
  0xe0   : > { %1468 = vmatpush.msra.mxu0 %v1083_v14  ;;  %1547 = vmatpush.msra.mxu1 %v1123_v34  ;;  %v1124_v14 = vld [vmem:[#allocation16 + $0x80] sm:$0xff] }
  0xe1   : > { %1567 = vmatpush.msra.mxu2 %v1124_v14  ;;  %v1189_v34 = vld [vmem:[#allocation19 + $0xf8] sm:$0xff]  ;;  %v1159_v14 = vld [vmem:[#allocation19 + $0x8] sm:$0xff] }
  0xe2   : > { %1469 = vmatpush.msra.mxu0 %v1080_v15  ;;  %1548 = vmatpush.msra.mxu1 %v1120_v36 }
  0xe3   : > { %1568 = vmatpush.msra.mxu2 %v1121_v22 }
  0xe4   : > { %1470 = vmatpush.msra.mxu0 %v1077_v16  ;;  %1549 = vmatpush.msra.mxu1 %v1117_v40  ;;  %v1186_v40 = vld [vmem:[#allocation19 + $0xe0] sm:$0xff] }
  0xe5   : > { %1569 = vmatpush.msra.mxu2 %v1118_v29  ;;  %v1175_v29 = vld [vmem:[#allocation19 + $0x88] sm:$0xff] }
  0xe6   : > { %1471 = vmatpush.msra.mxu0 %v1074_v17  ;;  %1550 = vmatpush.msra.mxu1 %v1114_v44  ;;  %v1134_v17 = vld [vmem:[#allocation16 + $0xd0] sm:$0xff] }
  0xe7   : > { %1584 = vmatpush.msra.mxu3 %v1134_v17  ;;  %1570 = vmatpush.msra.mxu2 %v1115_v35  ;;  %v1183_v44 = vld [vmem:[#allocation19 + $0xc8] sm:$0xff]  ;;  %v1172_v35 = vld [vmem:[#allocation19 + $0x70] sm:$0xff] }
  0xe8   : > { %1472 = vmatpush.msra.mxu0 %v1071_v18  ;;  %1551 = vmatpush.msra.mxu1 %v1111_v51  ;;  %v1182_v18 = vld [vmem:[#allocation19 + $0xc0] sm:$0xff] }
  0xe9   : > { %1585 = vmatpush.msra.mxu3 %v1131_v26  ;;  %1571 = vmatpush.msra.mxu2 %v1112_v41  ;;  %v1116_v51 = vld [vmem:[#allocation16 + $0x40] sm:$0xff] }
  0xea   : > { %1473 = vmatpush.msra.mxu0 %v1068_v19  ;;  %1552 = vmatpush.msra.mxu1 %v1108_v57  ;;  %v1195_v19 = vld [vmem:[#allocation19 + $0x128] sm:$0xff] }
  0xeb   : > { %1586 = vmatpush.msra.mxu3 %v1128_v32  ;;  %1572 = vmatpush.msra.mxu2 %v1109_v45  ;;  %v1113_v57 = vld [vmem:[#allocation16 + $0x28] sm:$0xff] }
  0xec   : > { %1474 = vmatpush.msra.mxu0 %v1065_v20  ;;  %1624 = vmatpush.msrb.mxu1 %v1204_v61  ;;  %v1163_v45 = vld [vmem:[#allocation19 + $0x28] sm:$0xff] }
  0xed   : > { %1587 = vmatpush.msra.mxu3 %v1125_v38 }
  0xee   : > { %1475 = vmatpush.msra.mxu0 %v1062_v21  ;;  %1625 = vmatpush.msrb.mxu1 %v1201_v4  ;;  %v1196_v4 = vld [vmem:[#allocation19 + $0x130] sm:$0xff] }
  0xef   : > { %1476 = vmatmul.f32.vlgmr.msra.gmra.mxu0 %v4082_v3  ;;  %1588 = vmatpush.msra.mxu3 %v1122_v42  ;;  %v1166_v42 = vld [vmem:[#allocation19 + $0x40] sm:$0xff] }
  0xf0   : > { %1604 = vmatpush.msrb.mxu0 %v1203_v39  ;;  %1626 = vmatpush.msrb.mxu1 %v1198_v8  ;;  %v1173_v39 = vld [vmem:[#allocation19 + $0x78] sm:$0xff] }
  0xf1   : > { %v1193_v8 = vld [vmem:[#allocation19 + $0x118] sm:$0xff] }
  0xf2   : > { %1605 = vmatpush.msrb.mxu0 %v1200_v43  ;;  %1627 = vmatpush.msrb.mxu1 %v1195_v19  ;;  %v1170_v43 = vld [vmem:[#allocation19 + $0x60] sm:$0xff]  ;;  %v1181_v19 = vld [vmem:[#allocation19 + $0xb8] sm:$0xff] }
  0xf4   : > { %1606 = vmatpush.msrb.mxu0 %v1197_v48  ;;  %1628 = vmatpush.msrb.mxu1 %v1192_v28  ;;  %v1180_v48 = vld [vmem:[#allocation19 + $0xb0] sm:$0xff] }
  0xf6   : > { %1607 = vmatpush.msrb.mxu0 %v1194_v54  ;;  %1629 = vmatpush.msrb.mxu1 %v1189_v34  ;;  %v1202_v54 = vld [vmem:[#allocation19 + $0x160] sm:$0xff] }
  0xf8   : > { %1608 = vmatpush.msrb.mxu0 %v1191_v60  ;;  %1630 = vmatpush.msrb.mxu1 %v1186_v40  ;;  %v1199_v60 = vld [vmem:[#allocation19 + $0x148] sm:$0xff] }
  0xfa   : > { %1609 = vmatpush.msrb.mxu0 %v1188_v0  ;;  %1631 = vmatpush.msrb.mxu1 %v1183_v44 }
  0xfc   : > { %1610 = vmatpush.msrb.mxu0 %v1185_v7  ;;  %1632 = vmatpush.msrb.mxu1 %v1180_v48  ;;  %v1168_v7 = vld [vmem:[#allocation19 + $0x50] sm:$0xff] }
  0xfe   : > { %1611 = vmatpush.msrb.mxu0 %v1182_v18  ;;  %1633 = vmatpush.msrb.mxu1 %v1177_v53 }
 0x100   : > { %1612 = vmatpush.msrb.mxu0 %v1179_v27  ;;  %1634 = vmatpush.msrb.mxu1 %v1174_v59  ;;  %v1219_v59 = vld [vmem:[#allocation20 + $0x68] sm:$0xff] }
 0x102   : > { %1613 = vmatpush.msrb.mxu0 %v1176_v33 }
 0x104   : > { %1614 = vmatpush.msrb.mxu0 %v1173_v39  ;;  %v1169_v39 = vld [vmem:[#allocation19 + $0x58] sm:$0xff] }
 0x106   : > { %1615 = vmatpush.msrb.mxu0 %v1170_v43 }
 0x108   : > { %1616 = vmatpush.msrb.mxu0 %v1167_v47  ;;  %v1160_v47 = vld [vmem:[#allocation19 + $0x10] sm:$0xff] }
 0x10a   : > { %1617 = vmatpush.msrb.mxu0 %v1164_v52 }
 0x10c   : > { %1618 = vmatpush.msrb.mxu0 %v1161_v58  ;;  %v1220_v58 = vld [vmem:[#allocation20 + $0x70] sm:$0xff] }
 0x10e   : > { %1619 = vmatpush.msrb.mxu0 %v1158_v63 }
 0x10f   : > { %1620 = vmatmul.f32.vlgmr.msrb.gmra.mxu0 %v4105_v6 }
 0x13d   : > { %v1320_v12 = vpop.f32.mrf.mxu1 }
 0x143   : > { %v1300_v46 = vpop.f32.mrf.mxu0 }
 0x144   : > { %v4087_v49 = vpop.f32.mrf.mxu2  ;;  %v1360_v50 = vpop.f32.mrf.mxu3 }
 0x145   : > { %v1361_v1 = vadd.f32 %v1360_v50, %v1300_v46  ;;  %v1119_v46 = vld [vmem:[#allocation16 + $0x58] sm:$0xff] }
 0x146   : > { %v1205_v50 = vld [vmem:[#allocation19 + $0x178] sm:$0xff]  ;;  %1589 = vmatpush.msra.mxu3 %v1119_v46 }
 0x147   : > { %v1410_v15 = vadd.f32 %v1404_v2, %v1361_v1  ;;  %1644 = vmatpush.msrb.mxu2 %v1205_v50  ;;  %v1171_v2 = vld [vmem:[#allocation19 + $0x68] sm:$0xff] }
 0x148   : > { %1590 = vmatpush.msra.mxu3 %v1116_v51  ;;  %1635 = vmatpush.msrb.mxu1 %v1171_v2 }
 0x149   : > { %1645 = vmatpush.msrb.mxu2 %v1202_v54 }
 0x14a   : > { %1591 = vmatpush.msra.mxu3 %v1113_v57  ;;  %1636 = vmatpush.msrb.mxu1 %v1168_v7  ;;  %v1221_v57 = vld [vmem:[#allocation20 + $0x78] sm:$0xff]  ;;  %v1214_v7 = vld [vmem:[#allocation20 + $0x40] sm:$0xff] }
 0x14b   : > { %1646 = vmatpush.msrb.mxu2 %v1199_v60  ;;  %v1218_v60 = vld [vmem:[#allocation20 + $0x60] sm:$0xff] }
 0x14c   : > { %v1380_v13 = vpop.f32.mrf.mxu0  ;;  %1592 = vmatpush.msra.mxu3 %v1110_v62  ;;  %v4124_v62 = vld [vmem:[%s4466_s5] sm:$0x7]  ;;  %s3729_s5 = smov [#allocation29]  }
 0x14d   : > { %v1381_v16 = vadd.f32 %v1380_v13, %v1320_v12  ;;  %1647 = vmatpush.msrb.mxu2 %v1196_v4  ;;  %v1187_v12 = vld [vmem:[#allocation19 + $0xe8] sm:$0xff]  ;;  %v1531_v2 = vperm.slane %v4124_v62, 0  ;;  %s2495_s23 = sshll.u32 %s3729_s5, 4  ;;  %s2496_s23 = int_to_ptr.vmem [resolvable:$true] %s2495_s23 }
 0x14e   : > { %v1437_v20 = vpop.f32.mrf.mxu2  ;;  %v1457_v21 = vpop.f32.mrf.mxu3  ;;  %1712 = vmatpush.msrb.mxu3 %v1221_v57  ;;  %v1215_v4 = vld [vmem:[#allocation20 + $0x48] sm:$0xff] }
 0x14f   : > { %v1411_v23 = vadd.f32 %v1405_v9, %v1381_v16  ;;  %v1438_v24 = vadd.f32 %v1437_v20, %v1414_v10  ;;  %v1458_v25 = vadd.f32 %v1457_v21, %v1415_v11  ;;  %v1165_v9 = vld [vmem:[#allocation19 + $0x38] sm:$0xff]  ;;  %v1190_v10 = vld [vmem:[#allocation19 + $0x100] sm:$0xff]  ;;  %1648 = vmatpush.msrb.mxu2 %v1193_v8  ;;  %v1400_v21 = vpop.f32.mrf.mxu1 }
 0x150   : > { %v1162_v11 = vld [vmem:[#allocation19 + $0x20] sm:$0xff]  ;;  %1637 = vmatpush.msrb.mxu1 %v1165_v9  ;;  %1713 = vmatpush.msrb.mxu3 %v1220_v58 }
 0x151   : > { %v1480_v30 = vadd.f32 %v1438_v24, %v1410_v15  ;;  %v1500_v31 = vadd.f32 %v1458_v25, %v1411_v23  ;;  %1649 = vmatpush.msrb.mxu2 %v1190_v10  ;;  %v1184_v15 = vld [vmem:[#allocation19 + $0xd0] sm:$0xff]  ;;  %v1178_v24 = vld [vmem:[#allocation19 + $0xa0] sm:$0xff]  ;;  %v1416_v25 = vperm.slane %v4097_v56, 2  ;;  %v1213_v10 = vld [vmem:[#allocation20 + $0x38] sm:$0xff] }
 0x152   : > { %1638 = vmatpush.msrb.mxu1 %v1162_v11  ;;  %1714 = vmatpush.msrb.mxu3 %v1219_v59 }
 0x153   : > { %v2784_v36 = vmul.f32 -1.442695, %v1480_v30  ;;  %v2785_v37 = vmul.f32 -1.442695, %v1500_v31  ;;  %1650 = vmatpush.msrb.mxu2 %v1187_v12  ;;  %v1401_v30 = vadd.f32 %v1400_v21, %v4087_v49  ;;  %v1406_v31 = vperm.slane %v4092_v55, 2  ;;  %v1212_v12 = vld [vmem:[#allocation20 + $0x30] sm:$0xff] }
 0x154   : > { %1639 = vmatpush.msrb.mxu1 %v1159_v14  ;;  %1715 = vmatpush.msrb.mxu3 %v1218_v60  ;;  %v1532_v14 = vperm.slane %v4124_v62, 1 }
 0x155   : > { %3028 = vpow2.f32 %v2784_v36  ;;  %1651 = vmatpush.msrb.mxu2 %v1184_v15  ;;  %v1412_v49 = vadd.f32 %v1406_v31, %v1401_v30  ;;  %v1271_v30 = vld [vmem:[#allocation5] sm:$0xff] }
 0x156   : > { %3030 = vpow2.f32 %v2785_v37 }
 0x157   : > { %1652 = vmatpush.msrb.mxu2 %v1181_v19  ;;  %v1209_v19 = vld [vmem:[#allocation20 + $0x18] sm:$0xff] }
 0x159   : > { %1653 = vmatpush.msrb.mxu2 %v1178_v24 }
 0x15b   : > { %v3029_v61 = vpop.eup %3028  ;;  %1654 = vmatpush.msrb.mxu2 %v1175_v29 }
 0x15c   : > { %v3031_v0 = vpop.eup %3030  ;;  %v1484_v1 = vadd.f32 1.0, %v3029_v61  ;;  %v4119_v61 = vld [vmem:[#allocation17] sm:$0x7] }
 0x15d   : > { %v4103_v5 = vadd.f32 1.0, %v3031_v0  ;;  %1655 = vmatpush.msrb.mxu2 %v1172_v35  ;;  %v1598_v63 = vperm.slane %v4119_v61, 0  ;;  %v1216_v0 = vld [vmem:[#allocation20 + $0x50] sm:$0xff]  ;;  %v1599_v15 = vperm.slane %v4119_v61, 1  ;;  %v1600_v35 = vperm.slane %v4119_v61, 2 }
 0x15e   : > { %3032 = vrcp.f32 %v1484_v1  ;;  %v1496_v23 = vand.u32 2147483648, %v1484_v1  ;;  %v1494_v27 = vand.u32 2147483647, %v1484_v1  ;;  %vm1490_vm1 = vweird.f32 %v1484_v1 }
 0x15f   : > { %3034 = vrcp.f32 %v4103_v5  ;;  %vm1510_vm4 = vweird.f32 %v4103_v5  ;;  %v1516_v55 = vand.u32 2147483648, %v4103_v5  ;;  %v1514_v41 = vand.u32 2147483647, %v4103_v5  ;;  %1656 = vmatpush.msrb.mxu2 %v1169_v39 }
 0x160   : > { %v1497_v34 = vor.u32 1.1754944e-38, %v1496_v23  ;;  %vm1495_vm3 = vcmp.eq.f32.partialorder %v1494_v27, 8.507059e+37  ;;  %v1208_v23 = vld [vmem:[#allocation20 + $0x10] sm:$0xff] }
 0x161   : > { %v1517_v46 = vor.u32 1.1754944e-38, %v1516_v55  ;;  %1657 = vmatpush.msrb.mxu2 %v1166_v42  ;;  %vm1515_vm7 = vcmp.eq.f32.partialorder %v1514_v41, 8.507059e+37 }
 0x163   : > { %1658 = vmatpush.msrb.mxu2 %v1163_v45 }
 0x164   : > { %v3033_v13 = vpop.eup %3032 }
 0x165   : > { %v3035_v16 = vpop.eup %3034  ;;  %v1486_v17 = vmul.f32 %v3033_v13, %v1484_v1  ;;  %vm1491_vm0 = vweird.f32 %v3033_v13  ;;  %1659 = vmatpush.msrb.mxu2 %v1160_v47 }
 0x166   : > { %v1506_v18 = vmul.f32 %v3035_v16, %v4103_v5  ;;  %vm1492_vm2 = vmor %vm1490_vm1, %vm1491_vm0  ;;  %vm1511_vm5 = vweird.f32 %v3035_v16  ;;  %vm4416_vm0 = vcmask 1041409   ;;  %vm4415_vm1 = vcmask 1042434  }
 0x167   : > { %v1487_v20 = vsub.f32 1.0, %v1486_v17  ;;  %vm1512_vm6 = vmor %vm1510_vm4, %vm1511_vm5  ;;  %v1210_v17 = vld [vmem:[#allocation20 + $0x20] sm:$0xff]  ;;  %vm4412_vm4 = vcmask 1045509   ;;  %vm4411_vm5 = vcmask 1046534  }
 0x168   : > { %v1507_v22 = vsub.f32 1.0, %v1506_v18 }
 0x169   : > { %v1488_v26 = vmul.f32 %v3033_v13, %v1487_v20 }
 0x16a   : > { %v1508_v28 = vmul.f32 %v3035_v16, %v1507_v22 }
 0x16b   : > { %v1489_v32 = vadd.f32 %v3033_v13, %v1488_v26 }
 0x16c   : > { %v1477_v33 = vpop.f32.mrf.mxu0  ;;  %v1509_v38 = vadd.f32 %v3035_v16, %v1508_v28  ;;  %v1206_v28 = vld [vmem:[#allocation20] sm:$0xff] }
 0x16d   : > { %v1478_v36 = vadd.f32 %v1477_v33, %v1416_v25  ;;  %v1493_v37 = vsel %vm1492_vm2, %v3033_v13, %v1489_v32  ;;  %v1207_v25 = vld [vmem:[#allocation20 + $0x8] sm:$0xff]  ;;  %vm4414_vm2 = vcmask 1043459  }
 0x16e   : > { %v1498_v56 = vsel %vm1495_vm3, %v1497_v34, %v1493_v37  ;;  %v1513_v44 = vsel %vm1512_vm6, %v3035_v16, %v1509_v38  ;;  %v1211_v16 = vld [vmem:[#allocation20 + $0x28] sm:$0xff]  ;;  %vm4413_vm3 = vcmask 1044484   ;;  %vm4410_vm6 = vcmask 1047559  }
 0x16f   : > { %v1520_v40 = vmul.f32 %v1498_v56, %v1478_v36  ;;  %v1518_v48 = vsel %vm1515_vm7, %v1517_v46, %v1513_v44  ;;  %vm1961_vm7 = vcmask 64512  }
 0x170   : > { %v1523_v50 = vsub.f32 1.0, %v1518_v48  ;;  %v1525_v53 = vmul.f32 %v1518_v48, %v4082_v3  ;;  %v1217_v3 = vld [vmem:[#allocation20 + $0x58] sm:$0xff] }
 0x171   : > { %v1521_v43 = vadd.f32 %v1520_v40, %v1412_v49  ;;  %1716 = vmatpush.msrb.mxu3 %v1217_v3  ;;  %v1533_v49 = vperm.slane %v4124_v62, 2 }
 0x173   : > { %3036 = vtanh.f32 %v1521_v43  ;;  %1717 = vmatpush.msrb.mxu3 %v1216_v0 }
 0x175   : > { %1718 = vmatpush.msrb.mxu3 %v1215_v4  ;;  %v1277_v4 = vld [vmem:[#allocation5 + $0x30] sm:$0xff] }
 0x177   : > { %1719 = vmatpush.msrb.mxu3 %v1214_v7  ;;  %v1273_v7 = vld [vmem:[#allocation5 + $0x10] sm:$0xff] }
 0x179   : > { %v3037_v51 = vpop.eup %3036  ;;  %1720 = vmatpush.msrb.mxu3 %v1213_v10 }
 0x17a   : > { %v1524_v52 = vmul.f32 %v3037_v51, %v1523_v50 }
 0x17b   : > { %1721 = vmatpush.msrb.mxu3 %v1212_v12  ;;  %v1274_v12 = vld [vmem:[#allocation5 + $0x18] sm:$0xff] }
 0x17c   : > { %v1526_v54 = vadd.f32 %v1525_v53, %v1524_v52 }
 0x17d   : > { %1722 = vmatpush.msrb.mxu3 %v1211_v16 }
 0x17e   : > { %1553 = vmatmul.f32.vlgmr.msra.gmra.mxu1 %v1526_v54  ;;  %1527 = vst [vmem:[#allocation27] sm:$0xff] %v1526_v54  ;;  %1573 = vmatmul.f32.vlgmr.msra.gmra.mxu2 %v1526_v54 }
 0x17f   : > { %1593 = vmatmul.f32.vlgmr.msra.gmra.mxu3 %v1526_v54  ;;  %1882 = vmatpush.xpose.msra.mxu2 %v1277_v4 }
 0x180   : > { %1723 = vmatpush.msrb.mxu3 %v1210_v17 }
 0x182   : > { %1724 = vmatpush.msrb.mxu3 %v1209_v19  ;;  %v1279_v19 = vld [vmem:[#allocation7] sm:$0xff] }
 0x184   : > { %1725 = vmatpush.msrb.mxu3 %v1208_v23 }
 0x186   : > { %1640 = vmatmul.f32.vlgmr.msrb.gmra.mxu1 %v4105_v6  ;;  %1660 = vmatmul.f32.vlgmr.msrb.gmra.mxu2 %v4105_v6 }
 0x187   : > { %1726 = vmatpush.msrb.mxu3 %v1207_v25  ;;  %2231 = vmatpush.msrb.mxu2 %v1273_v7 }
 0x189   : > { %1727 = vmatpush.msrb.mxu3 %v1206_v28  ;;  %v1912_v28 = vrot.slane %v1279_v19, 5 }
 0x18b   : > { %1762 = vmatpush.xpose.msra.mxu3 %v1271_v30 }
 0x18c   : > { %v1621_v1 = vpop.f32.mrf.mxu0 }
 0x18d   : > { %v1622_v5 = vadd.f32 %v1621_v1, %v1598_v63  ;;  %v1275_v1 = vld [vmem:[#allocation5 + $0x20] sm:$0xff] }
 0x18e   : > { %1842 = vmatpush.xpose.msra.mxu0 %v1275_v1 }
 0x192   : > { %2185 = vmatpush.msrb.mxu0 %v1271_v30 }
 0x1fb   : > { %v1554_v8 = vpop.f32.mrf.mxu1 }
 0x1fc   : > { %v1555_v9 = vadd.f32 %v1554_v8, %v1531_v2  ;;  %v1276_v2 = vld [vmem:[#allocation5 + $0x28] sm:$0xff] }
 0x1fd   : > { %1862 = vmatpush.xpose.msra.mxu1 %v1276_v2 }
 0x1fe   : > { %v1664_v11 = vadd.f32 %v1622_v5, %v1555_v9  ;;  %v1272_v5 = vld [vmem:[#allocation5 + $0x8] sm:$0xff] }
 0x200   : > { %v2786_v13 = vmul.f32 -1.442695, %v1664_v11 }
 0x201   : > { %v1574_v18 = vpop.f32.mrf.mxu2  ;;  %2208 = vmatpush.msrb.mxu1 %v1272_v5 }
 0x202   : > { %3038 = vpow2.f32 %v2786_v13  ;;  %v1575_v21 = vadd.f32 %v1574_v18, %v1532_v14  ;;  %v1594_v42 = vpop.f32.mrf.mxu3  ;;  %v1278_v14 = vld [vmem:[#allocation5 + $0x38] sm:$0xff] }
 0x203   : > { %v1641_v20 = vpop.f32.mrf.mxu1  ;;  %v1595_v47 = vadd.f32 %v1594_v42, %v1533_v49 }
 0x204   : > { %v1642_v22 = vadd.f32 %v1641_v20, %v1599_v15  ;;  %v1908_v20 = vrot.slane %v1279_v19, 1 }
 0x206   : > { %v1684_v24 = vadd.f32 %v1642_v22, %v1575_v21  ;;  %v1909_v22 = vrot.slane %v1279_v19, 2 }
 0x208   : > { %v3039_v26 = vpop.eup %3038  ;;  %v2787_v27 = vmul.f32 -1.442695, %v1684_v24  ;;  %v1911_v24 = vrot.slane %v1279_v19, 4 }
 0x209   : > { %v1668_v29 = vadd.f32 1.0, %v3039_v26  ;;  %v1661_v37 = vpop.f32.mrf.mxu2 }
 0x20a   : > { %3040 = vpow2.f32 %v2787_v27  ;;  %v1662_v40 = vadd.f32 %v1661_v37, %v1600_v35  ;;  %v1910_v27 = vrot.slane %v1279_v19, 3 }
 0x20b   : > { %3042 = vrcp.f32 %v1668_v29  ;;  %v1680_v56 = vand.u32 2147483648, %v1668_v29  ;;  %v1678_v39 = vand.u32 2147483647, %v1668_v29  ;;  %vm1674_vm9 = vweird.f32 %v1668_v29 }
 0x20d   : > { %v1681_v43 = vor.u32 1.1754944e-38, %v1680_v56  ;;  %vm1679_vm11 = vcmp.eq.f32.partialorder %v1678_v39, 8.507059e+37 }
 0x210   : > { %v3041_v31 = vpop.eup %3040 }
 0x211   : > { %v3043_v32 = vpop.eup %3042  ;;  %v1688_v33 = vadd.f32 1.0, %v3041_v31 }
 0x212   : > { %v1670_v34 = vmul.f32 %v3043_v32, %v1668_v29  ;;  %vm1675_vm8 = vweird.f32 %v3043_v32 }
 0x213   : > { %3044 = vrcp.f32 %v1688_v33  ;;  %vm1676_vm10 = vmor %vm1674_vm9, %vm1675_vm8  ;;  %v1700_v51 = vand.u32 2147483648, %v1688_v33  ;;  %v1698_v54 = vand.u32 2147483647, %v1688_v33  ;;  %vm1694_vm13 = vweird.f32 %v1688_v33 }
 0x214   : > { %v1671_v36 = vsub.f32 1.0, %v1670_v34 }
 0x215   : > { %v1701_v58 = vor.u32 1.1754944e-38, %v1700_v51  ;;  %vm1699_vm15 = vcmp.eq.f32.partialorder %v1698_v54, 8.507059e+37 }
 0x216   : > { %v1672_v38 = vmul.f32 %v3043_v32, %v1671_v36  ;;  %v1913_v36 = vrot.slane %v1279_v19, 6 }
 0x218   : > { %v1673_v55 = vadd.f32 %v3043_v32, %v1672_v38 }
 0x219   : > { %v3045_v41 = vpop.eup %3044 }
 0x21a   : > { %v1690_v44 = vmul.f32 %v3045_v41, %v1688_v33  ;;  %v1677_v45 = vsel %vm1676_vm10, %v3043_v32, %v1673_v55  ;;  %vm1695_vm12 = vweird.f32 %v3045_v41 }
 0x21b   : > { %v1682_v46 = vsel %vm1679_vm11, %v1681_v43, %v1677_v45  ;;  %vm1696_vm14 = vmor %vm1694_vm13, %vm1695_vm12 }
 0x21c   : > { %v1691_v48 = vsub.f32 1.0, %v1690_v44  ;;  %v1704_v50 = vmul.f32 %v1682_v46, %v1662_v40 }
 0x21e   : > { %v1705_v52 = vadd.f32 %v1704_v50, %v1595_v47  ;;  %v1692_v53 = vmul.f32 %v3045_v41, %v1691_v48 }
 0x220   : > { %3046 = vtanh.f32 %v1705_v52  ;;  %v1693_v57 = vadd.f32 %v3045_v41, %v1692_v53 }
 0x222   : > { %v1697_v59 = vsel %vm1696_vm14, %v3045_v41, %v1693_v57  ;;  %v1914_v41 = vrot.slane %v1279_v19, 7 }
 0x223   : > { %v1702_v60 = vsel %vm1699_vm15, %v1701_v58, %v1697_v59 }
 0x224   : > { %v1707_v61 = vsub.f32 1.0, %v1702_v60  ;;  %v1709_v63 = vmul.f32 %v1702_v60, %v4105_v6 }
 0x226   : > { %v3047_v3 = vpop.eup %3046 }
 0x227   : > { %v1708_v62 = vmul.f32 %v3047_v3, %v1707_v61 }
 0x229   : > { %v4133_v0 = vadd.f32 %v1709_v63, %v1708_v62 }
 0x22b   : > { %1728 = vmatmul.f32.vlgmr.msrb.gmra.mxu3 %v4133_v0  ;;  %1711 = vst [vmem:[#allocation27 + $0x8] sm:$0xff] %v4133_v0 }
 0x22c   : > { %1782 = vmatpush.xpose.msrb.mxu3 %v1272_v5  ;;  %2864 = dma.vmem_to_hbm [thread:$0]  (%p4008_p10), %s2479_s11, 256, %s2481_s19, [#allocation28], %s3727_s29, %s3727_s29, %s3728_s1  }
 0x22d   : > { %s2463_s19 = scalar_lea.hbm %s4488_s13, %s2797_s10  ;;  %s2465_s11 = sshll.u32 %s4078_s6, 4  ;;  %s2466_s11 = int_to_ptr.vmem [resolvable:$true] %s2465_s11 }
 0x22e   : > { %s2467_s29 = sshll.u32 %s2463_s19, 4  ;;  %s2468_s29 = int_to_ptr.hbm [resolvable:$true] %s2467_s29 }
 0x22f   : > { %s3606_s1 = sshra.s32 %s2468_s29, 4  ;;  %s3607_s1 = int_to_ptr.hbm [resolvable:$true] %s3606_s1 }
 0x230   : > { %s3608_s5 = scalar_lea.hbm %s3607_s1, 8  ;;  %p3613_p9 = scmp.lt.s32.totalorder %s3607_s1, %s4488_s13 }
 0x231   : > { %p3609_p1 = scmp.ne.s32.totalorder %s3607_s1, %s3608_s5  ;;  %p3614_p11 = scmp.lt.s32.totalorder %s3612_s18, %s3608_s5 }
 0x233   : > { %p3610_p7 = pnand %p3609_p1, %p4020_p13  ;;  %p3615_p12 = por %p3614_p11, %p3613_p9 }
 0x235   : > { %p3611_p8 = pneg %p3610_p7 }
 0x237   : > { %p3616_p0 = pnand %p3615_p12, %p3611_p8 }
 0x2ae   : > { %v1729_v8 = vpop.f32.mrf.mxu3 }
 0x2af   : > { %1763 = vmatmul.f32.vlgmr.msra.gmra.mxu3 %v1729_v8  ;;  %v1736_v6 = vrot.slane %v1729_v8, 4  ;;  %v1737_v9 = vrot.slane %v1729_v8, 5  ;;  %v1738_v10 = vrot.slane %v1729_v8, 6  ;;  %v1733_v11 = vrot.slane %v1729_v8, 1 }
 0x2b0   : > { %1802 = vmatpush.xpose.msra.mxu3 %v1273_v7  ;;  %v1734_v13 = vrot.slane %v1729_v8, 2  ;;  %v1735_v15 = vrot.slane %v1729_v8, 3  ;;  %v1739_v16 = vrot.slane %v1729_v8, 7 }
 0x2b1   : > { %1843 = vmatmul.f32.vlgmr.msra.gmra.mxu0 %v1736_v6  ;;  %1863 = vmatmul.f32.vlgmr.msra.gmra.mxu1 %v1737_v9 }
 0x2b2   : > { %1883 = vmatmul.f32.vlgmr.msra.gmra.mxu2 %v1738_v10  ;;  %2277 = vmatpush.msra.mxu0 %v1275_v1 }
 0x2b3   : > { %2323 = vmatpush.msra.mxu2 %v1277_v4  ;;  %2300 = vmatpush.msra.mxu1 %v1276_v2 }
 0x2b7   : > { %1783 = vmatmul.f32.vlgmr.msrb.gmra.mxu3 %v1733_v11 }
 0x2b8   : > { %1822 = vmatpush.xpose.msrb.mxu3 %v1274_v12 }
 0x2bf   : > { %1803 = vmatmul.f32.vlgmr.msra.gmra.mxu3 %v1734_v13 }
 0x2c0   : > { %1902 = vmatpush.xpose.msra.mxu3 %v1278_v14 }
 0x2c7   : > { %1823 = vmatmul.f32.vlgmr.msrb.gmra.mxu3 %v1735_v15 }
 0x2c8   : > { %2254 = vmatpush.msrb.mxu3 %v1274_v12 }
 0x2cf   : > { %1903 = vmatmul.f32.vlgmr.msra.gmra.mxu3 %v1739_v16 }
 0x2d0   : > { %2346 = vmatpush.msra.mxu3 %v1278_v14 }
 0x32e   : > { %v1844_v26 = vpop.f32.mrf.mxu0  ;;  %v1864_v31 = vpop.f32.mrf.mxu1 }
 0x32f   : > { %v1927_v30 = vadd.f32 %v1911_v24, %v1844_v26  ;;  %v1928_v37 = vadd.f32 %v1912_v28, %v1864_v31 }
 0x331   : > { %v1948_v49 = vrot.slane %v1927_v30, 4  ;;  %v1951_v44 = vrot.slane %v1928_v37, 3 }
 0x332   : > { %v1764_v17 = vpop.f32.mrf.mxu3 }
 0x333   : > { %v1923_v34 = vadd.f32 %v1764_v17, %v1279_v19 }
 0x335   : > { %v1884_v56 = vpop.f32.mrf.mxu2 }
 0x336   : > { %v1929_v42 = vadd.f32 %v1913_v36, %v1884_v56 }
 0x338   : > { %v1954_v48 = vrot.slane %v1929_v42, 2 }
 0x33a   : > { %v1784_v18 = vpop.f32.mrf.mxu3 }
 0x33b   : > { %v1924_v23 = vadd.f32 %v1908_v20, %v1784_v18 }
 0x33d   : > { %v1939_v29 = vrot.slane %v1924_v23, 7 }
 0x33f   : > { %v1941_v38 = vsel %vm4416_vm0, %v1939_v29, %v1923_v34 }
 0x342   : > { %v1804_v21 = vpop.f32.mrf.mxu3 }
 0x343   : > { %v1925_v25 = vadd.f32 %v1909_v22, %v1804_v21 }
 0x345   : > { %v1942_v32 = vrot.slane %v1925_v25, 6 }
 0x347   : > { %v1944_v40 = vsel %vm4415_vm1, %v1942_v32, %v1941_v38 }
 0x34a   : > { %v1824_v33 = vpop.f32.mrf.mxu3 }
 0x34b   : > { %v1926_v35 = vadd.f32 %v1910_v27, %v1824_v33 }
 0x34d   : > { %v1945_v39 = vrot.slane %v1926_v35, 5 }
 0x34f   : > { %v1947_v55 = vsel %vm4414_vm2, %v1945_v39, %v1944_v40 }
 0x350   : > { %v1950_v43 = vsel %vm4413_vm3, %v1948_v49, %v1947_v55 }
 0x351   : > { %v1953_v47 = vsel %vm4412_vm4, %v1951_v44, %v1950_v43 }
 0x352   : > { %v1904_v45 = vpop.f32.mrf.mxu3  ;;  %v1956_v51 = vsel %vm4411_vm5, %v1954_v48, %v1953_v47 }
 0x353   : > { %v1930_v46 = vadd.f32 %v1914_v41, %v1904_v45 }
 0x355   : > { %v1957_v50 = vrot.slane %v1930_v46, 1 }
 0x357   : > { %v1959_v52 = vsel %vm4410_vm6, %v1957_v50, %v1956_v51 }
 0x358   : > { %v1962_v53 = vsel %vm1961_vm7, %v1959_v52, -inf }
 0x359   : > { %1963 = vmax.xlane.f32.xlu0 %v1962_v53 }
 0x3cc   : > { %v1964_v54 = vpop.xlane.xlu0 %1963 }
 0x3cd   : > { %v1966_v57 = vrot.slane %v1964_v54, 1  ;;  %v1967_v58 = vrot.slane %v1964_v54, 2  ;;  %v1968_v59 = vrot.slane %v1964_v54, 3  ;;  %v1969_v60 = vrot.slane %v1964_v54, 4 }
 0x3ce   : > { %v1970_v61 = vrot.slane %v1964_v54, 5  ;;  %v1981_v3 = vsub.f32 %v1923_v34, %v1964_v54  ;;  %v1971_v62 = vrot.slane %v1964_v54, 6  ;;  %v1972_v63 = vrot.slane %v1964_v54, 7 }
 0x3cf   : > { %v1982_v1 = vsub.f32 %v1924_v23, %v1966_v57  ;;  %v1983_v2 = vsub.f32 %v1925_v25, %v1967_v58  ;;  %v1984_v4 = vsub.f32 %v1926_v35, %v1968_v59  ;;  %v1985_v5 = vsub.f32 %v1927_v30, %v1969_v60 }
 0x3d0   : > { %v1989_v7 = vmul.f32 1.442695, %v1981_v3  ;;  %v1986_v8 = vsub.f32 %v1928_v37, %v1970_v61  ;;  %v1987_v6 = vsub.f32 %v1929_v42, %v1971_v62  ;;  %v1988_v12 = vsub.f32 %v1930_v46, %v1972_v63 }
 0x3d1   : > { %v1991_v9 = vmul.f32 1.442695, %v1982_v1  ;;  %v1993_v10 = vmul.f32 1.442695, %v1983_v2  ;;  %v1995_v11 = vmul.f32 1.442695, %v1984_v4 }
 0x3d2   : > { %3048 = vpow2.f32 %v1989_v7  ;;  %v1997_v13 = vmul.f32 1.442695, %v1985_v5  ;;  %v1999_v14 = vmul.f32 1.442695, %v1986_v8  ;;  %v2001_v15 = vmul.f32 1.442695, %v1987_v6 }
 0x3d3   : > { %3050 = vpow2.f32 %v1991_v9  ;;  %v2003_v16 = vmul.f32 1.442695, %v1988_v12  ;;  %v1235_v8 = vld [vmem:[#allocation22 + $0x68] sm:$0xff] }
 0x3d4   : > { %3052 = vpow2.f32 %v1993_v10 }
 0x3d5   : > { %3054 = vpow2.f32 %v1995_v11  ;;  %v1234_v11 = vld [vmem:[#allocation22 + $0x60] sm:$0xff] }
 0x3d6   : > { %3056 = vpow2.f32 %v1997_v13 }
 0x3d7   : > { %3058 = vpow2.f32 %v1999_v14 }
 0x3d8   : > { %v4145_v17 = vpop.eup %3048  ;;  %3060 = vpow2.f32 %v2001_v15 }
 0x3d9   : > { %v4147_v18 = vpop.eup %3050  ;;  %3062 = vpow2.f32 %v2003_v16 }
 0x3da   : > { %v4149_v19 = vpop.eup %3052  ;;  %v2013_v20 = vrot.slane %v4147_v18, 7 }
 0x3db   : > { %v4152_v21 = vpop.eup %3054  ;;  %v2015_v22 = vrot.slane %v4149_v19, 6 }
 0x3dc   : > { %v4155_v23 = vpop.eup %3056  ;;  %v2014_v24 = vsel %vm4416_vm0, %v2013_v20, %v4145_v17  ;;  %v2017_v25 = vrot.slane %v4152_v21, 5 }
 0x3dd   : > { %v4160_v26 = vpop.eup %3058  ;;  %v2016_v27 = vsel %vm4415_vm1, %v2015_v22, %v2014_v24  ;;  %v2019_v28 = vrot.slane %v4155_v23, 4 }
 0x3de   : > { %v4164_v29 = vpop.eup %3060  ;;  %v2018_v30 = vsel %vm4414_vm2, %v2017_v25, %v2016_v27  ;;  %v2021_v31 = vrot.slane %v4160_v26, 3 }
 0x3df   : > { %v4168_v32 = vpop.eup %3062  ;;  %v2020_v33 = vsel %vm4413_vm3, %v2019_v28, %v2018_v30  ;;  %v2023_v34 = vrot.slane %v4164_v29, 2 }
 0x3e0   : > { %v2022_v35 = vsel %vm4412_vm4, %v2021_v31, %v2020_v33  ;;  %v2025_v36 = vrot.slane %v4168_v32, 1 }
 0x3e1   : > { %v2024_v37 = vsel %vm4411_vm5, %v2023_v34, %v2022_v35 }
 0x3e2   : > { %v2026_v56 = vsel %vm4410_vm6, %v2025_v36, %v2024_v37  ;;  %v1253_v37 = vld [vmem:[#allocation23 + $0x78] sm:$0xff] }
 0x3e3   : > { %v2028_v38 = vsel %vm1961_vm7, %v2026_v56, 0.0 }
 0x3e4   : > { %2029 = vadd.xlane.f32.xlu0 %v2028_v38 }
 0x457   : > { %v4177_v39 = vpop.xlane.xlu0 %2029 }
 0x458   : > { %3064 = vrcp.f32 %v4177_v39  ;;  %v4181_v49 = vrot.slane %v4177_v39, 1  ;;  %v4184_v40 = vrot.slane %v4177_v39, 2  ;;  %v4187_v55 = vrot.slane %v4177_v39, 3 }
 0x459   : > { %v2056_v41 = vand.u32 2147483647, %v4177_v39  ;;  %v4192_v42 = vrot.slane %v4177_v39, 4  ;;  %v2058_v43 = vand.u32 2147483648, %v4177_v39  ;;  %v4199_v45 = vrot.slane %v4177_v39, 5 }
 0x45a   : > { %3066 = vrcp.f32 %v4181_v49  ;;  %v2073_v44 = vand.u32 2147483648, %v4181_v49  ;;  %vm2052_vm8 = vweird.f32 %v4177_v39  ;;  %v2071_v47 = vand.u32 2147483647, %v4181_v49 }
 0x45b   : > { %3068 = vrcp.f32 %v4184_v40  ;;  %v2088_v48 = vand.u32 2147483648, %v4184_v40  ;;  %vm4205_vm9 = vcmp.eq.f32.partialorder %v2056_v41, 8.507059e+37  ;;  %v2086_v52 = vand.u32 2147483647, %v4184_v40 }
 0x45c   : > { %3070 = vrcp.f32 %v4187_v55  ;;  %v2103_v53 = vand.u32 2147483648, %v4187_v55  ;;  %v2059_v54 = vor.u32 1.1754944e-38, %v2058_v43  ;;  %vm2067_vm10 = vweird.f32 %v4181_v49 }
 0x45d   : > { %3072 = vrcp.f32 %v4192_v42  ;;  %v2101_v57 = vand.u32 2147483647, %v4187_v55  ;;  %v4215_v58 = vrot.slane %v4177_v39, 6  ;;  %v2074_v61 = vor.u32 1.1754944e-38, %v2073_v44 }
 0x45e   : > { %v3065_v46 = vpop.eup %3064  ;;  %vm2082_vm11 = vweird.f32 %v4184_v40  ;;  %3074 = vrcp.f32 %v4199_v45  ;;  %vm4220_vm12 = vcmp.eq.f32.partialorder %v2071_v47, 8.507059e+37  ;;  %v2089_v1 = vor.u32 1.1754944e-38, %v2088_v48  ;;  %v1252_v48 = vld [vmem:[#allocation23 + $0x70] sm:$0xff] }
 0x45f   : > { %v2048_v50 = vmul.f32 %v3065_v46, %v4177_v39  ;;  %vm2097_vm13 = vweird.f32 %v4187_v55  ;;  %v2118_v2 = vand.u32 2147483648, %v4192_v42  ;;  %vm2053_vm14 = vweird.f32 %v3065_v46 }
 0x460   : > { %v3067_v59 = vpop.eup %3066  ;;  %vm4227_vm15 = vcmp.eq.f32.partialorder %v2086_v52, 8.507059e+37  ;;  %v2104_v6 = vor.u32 1.1754944e-38, %v2103_v53  ;;  %vm4232_vm6 = vcmp.eq.f32.partialorder %v2101_v57, 8.507059e+37  ;;  %vm2112_vm5 = vweird.f32 %v4192_v42  ;;  %vm2054_vm3 = vmor %vm2052_vm8, %vm2053_vm14 }
 0x461   : > { %v2049_v60 = vsub.f32 1.0, %v2048_v50  ;;  %v3069_v3 = vpop.eup %3068  ;;  %v2063_v62 = vmul.f32 %v3067_v59, %v4181_v49  ;;  %v2116_v12 = vand.u32 2147483647, %v4192_v42  ;;  %v2131_v13 = vand.u32 2147483647, %v4199_v45 }
 0x462   : > { %v3071_v4 = vpop.eup %3070  ;;  %v2078_v7 = vmul.f32 %v3069_v3, %v4184_v40  ;;  %vm2068_vm4 = vweird.f32 %v3067_v59  ;;  %3076 = vrcp.f32 %v4215_v58  ;;  %v2119_v25 = vor.u32 1.1754944e-38, %v2118_v2 }
 0x463   : > { %v2050_v5 = vmul.f32 %v3065_v46, %v2049_v60  ;;  %v2064_v9 = vsub.f32 1.0, %v2063_v62  ;;  %v2093_v10 = vmul.f32 %v3071_v4, %v4187_v55  ;;  %v3073_v14 = vpop.eup %3072  ;;  %vm2083_vm2 = vweird.f32 %v3069_v3  ;;  %vm2069_vm8 = vmor %vm2067_vm10, %vm2068_vm4  ;;  %v1251_v55 = vld [vmem:[#allocation23 + $0x68] sm:$0xff]  ;;  %v1236_v62 = vld [vmem:[#allocation22 + $0x70] sm:$0xff] }
 0x464   : > { %v2079_v16 = vsub.f32 1.0, %v2078_v7  ;;  %v2108_v24 = vmul.f32 %v3073_v14, %v4192_v42  ;;  %v4244_v27 = vpop.eup %3074  ;;  %vm2098_vm1 = vweird.f32 %v3071_v4  ;;  %vm2127_vm0 = vweird.f32 %v4199_v45  ;;  %v1250_v42 = vld [vmem:[#allocation23 + $0x60] sm:$0xff] }
 0x465   : > { %v2051_v15 = vadd.f32 %v3065_v46, %v2050_v5  ;;  %v2065_v20 = vmul.f32 %v3067_v59, %v2064_v9  ;;  %v2094_v22 = vsub.f32 1.0, %v2093_v10  ;;  %v2123_v38 = vmul.f32 %v4244_v27, %v4199_v45  ;;  %vm2099_vm4 = vmor %vm2097_vm13, %vm2098_vm1 }
 0x466   : > { %v2080_v30 = vmul.f32 %v3069_v3, %v2079_v16  ;;  %v2109_v35 = vsub.f32 1.0, %v2108_v24  ;;  %v2133_v41 = vand.u32 2147483648, %v4199_v45  ;;  %vm2128_vm10 = vweird.f32 %v4244_v27 }
 0x467   : > { %v2055_v28 = vsel %vm2054_vm3, %v3065_v46, %v2051_v15  ;;  %v2066_v33 = vadd.f32 %v3067_v59, %v2065_v20  ;;  %v2095_v34 = vmul.f32 %v3071_v4, %v2094_v22  ;;  %vm2084_vm3 = vmor %vm2082_vm11, %vm2083_vm2  ;;  %v2124_v50 = vsub.f32 1.0, %v2123_v38  ;;  %v1233_v15 = vld [vmem:[#allocation22 + $0x58] sm:$0xff]  ;;  %v1247_v20 = vld [vmem:[#allocation23 + $0x48] sm:$0xff] }
 0x468   : > { %v2060_v31 = vsel %vm4205_vm9, %v2059_v54, %v2055_v28  ;;  %v2081_v56 = vadd.f32 %v3069_v3, %v2080_v30  ;;  %v2110_v46 = vmul.f32 %v3073_v14, %v2109_v35  ;;  %vm2113_vm9 = vweird.f32 %v3073_v14  ;;  %v4258_v47 = vpop.eup %3076  ;;  %v1237_v54 = vld [vmem:[#allocation22 + $0x78] sm:$0xff]  ;;  %v1243_v35 = vld [vmem:[#allocation23 + $0x28] sm:$0xff] }
 0x469   : > { %v2061_v36 = vmul.f32 %v4145_v17, %v2060_v31  ;;  %v2070_v43 = vsel %vm2069_vm8, %v3067_v59, %v2066_v33  ;;  %v2096_v44 = vadd.f32 %v3071_v4, %v2095_v34  ;;  %vm2114_vm1 = vmor %vm2112_vm5, %vm2113_vm9  ;;  %v2125_v60 = vmul.f32 %v4244_v27, %v2124_v50  ;;  %v1244_v31 = vld [vmem:[#allocation23 + $0x30] sm:$0xff]  ;;  %v1229_v50 = vld [vmem:[#allocation22 + $0x38] sm:$0xff] }
 0x46a   : > { %v2075_v17 = vsel %vm4220_vm12, %v2074_v61, %v2070_v43  ;;  %v2085_v49 = vsel %vm2084_vm3, %v3069_v3, %v2081_v56  ;;  %v2111_v53 = vadd.f32 %v3073_v14, %v2110_v46  ;;  %vm2117_vm2 = vcmp.eq.f32.partialorder %v2116_v12, 8.507059e+37  ;;  %vm2129_vm5 = vmor %vm2127_vm0, %vm2128_vm10  ;;  %v1239_v46 = vld [vmem:[#allocation23 + $0x8] sm:$0xff] }
 0x46b   : > { %2788 = vmatmul.msk.f32.vlgmr.msrb.gmra.mxu0 %vm1961_vm7, %v2061_v36  ;;  %v2076_v40 = vmul.f32 %v4147_v18, %v2075_v17  ;;  %v2090_v51 = vsel %vm4227_vm15, %v2089_v1, %v2085_v49  ;;  %v2100_v52 = vsel %vm2099_vm4, %v3071_v4, %v2096_v44  ;;  %v2138_v18 = vmul.f32 %v4258_v47, %v4215_v58  ;;  %v1240_v44 = vld [vmem:[#allocation23 + $0x10] sm:$0xff]  ;;  %v1231_v49 = vld [vmem:[#allocation22 + $0x48] sm:$0xff] }
 0x46c   : > { %2351 = vmatpush.msrb.mxu0 %v1253_v37  ;;  %v2091_v57 = vmul.f32 %v4149_v19, %v2090_v51  ;;  %v2105_v59 = vsel %vm4232_vm6, %v2104_v6, %v2100_v52  ;;  %v2115_v3 = vsel %vm2114_vm1, %v3073_v14, %v2111_v53  ;;  %vm4281_vm11 = vcmp.eq.f32.partialorder %v2131_v13, 8.507059e+37  ;;  %v1248_v13 = vld [vmem:[#allocation23 + $0x50] sm:$0xff]  ;;  %v1242_v37 = vld [vmem:[#allocation23 + $0x20] sm:$0xff]  ;;  %v1225_v52 = vld [vmem:[#allocation22 + $0x18] sm:$0xff] }
 0x46d   : > { %2789 = vmatmul.msk.f32.vlgmr.msrb.gmra.mxu1 %vm1961_vm7, %v2076_v40  ;;  %v2106_v61 = vmul.f32 %v4152_v21, %v2105_v59  ;;  %v2120_v63 = vsel %vm2117_vm2, %v2119_v25, %v2115_v3  ;;  %v2126_v1 = vadd.f32 %v4244_v27, %v2125_v60  ;;  %v2139_v2 = vsub.f32 1.0, %v2138_v18  ;;  %v1246_v25 = vld [vmem:[#allocation23 + $0x40] sm:$0xff]  ;;  %v1232_v17 = vld [vmem:[#allocation22 + $0x50] sm:$0xff]  ;;  %v1227_v40 = vld [vmem:[#allocation22 + $0x28] sm:$0xff] }
 0x46e   : > { %2352 = vmatpush.msrb.mxu0 %v1252_v48  ;;  %2790 = vmatmul.msk.f32.vlgmr.msrb.gmra.mxu2 %vm1961_vm7, %v2091_v57  ;;  %v2038_v4 = vrot.slane %v4177_v39, 7  ;;  %v2134_v21 = vor.u32 1.1754944e-38, %v2133_v41  ;;  %vm2143_vm6 = vweird.f32 %v4258_v47  ;;  %v2146_v5 = vand.u32 2147483647, %v4215_v58  ;;  %v1249_v39 = vld [vmem:[#allocation23 + $0x58] sm:$0xff]  ;;  %v1230_v48 = vld [vmem:[#allocation22 + $0x40] sm:$0xff] }
 0x46f   : > { %2394 = vmatpush.msrb.mxu1 %v1237_v54  ;;  %2791 = vmatmul.msk.f32.vlgmr.msrb.gmra.mxu3 %vm1961_vm7, %v2106_v61  ;;  %v2148_v7 = vand.u32 2147483648, %v4215_v58  ;;  %v2121_v6 = vmul.f32 %v4155_v23, %v2120_v63  ;;  %v2130_v9 = vsel %vm2129_vm5, %v4244_v27, %v2126_v1  ;;  %v2140_v10 = vmul.f32 %v4258_v47, %v2139_v2  ;;  %v1245_v27 = vld [vmem:[#allocation23 + $0x38] sm:$0xff]  ;;  %v1226_v51 = vld [vmem:[#allocation22 + $0x20] sm:$0xff]  ;;  %v1224_v53 = vld [vmem:[#allocation22 + $0x10] sm:$0xff] }
 0x470   : > { %2353 = vmatpush.msrb.mxu0 %v1251_v55  ;;  %3078 = vrcp.f32 %v2038_v4  ;;  %v2135_v45 = vsel %vm4281_vm11, %v2134_v21, %v2130_v9  ;;  %vm2142_vm0 = vweird.f32 %v4215_v58  ;;  %vm2147_vm13 = vcmp.eq.f32.partialorder %v2146_v5, 8.507059e+37  ;;  %v1241_v41 = vld [vmem:[#allocation23 + $0x18] sm:$0xff]  ;;  %v1223_v54 = vld [vmem:[#allocation22 + $0x8] sm:$0xff]  ;;  %v1268_v59 = vld [vmem:[#allocation25 + $0x70] sm:$0xff] }
 0x471   : > { %2395 = vmatpush.msrb.mxu1 %v1236_v62  ;;  %v2141_v12 = vadd.f32 %v4258_v47, %v2140_v10  ;;  %v2136_v23 = vmul.f32 %v4160_v26, %v2135_v45  ;;  %vm2144_vm12 = vmor %vm2142_vm0, %vm2143_vm6  ;;  %v2149_v14 = vor.u32 1.1754944e-38, %v2148_v7  ;;  %v2163_v30 = vand.u32 2147483648, %v2038_v4  ;;  %v1269_v57 = vld [vmem:[#allocation25 + $0x78] sm:$0xff]  ;;  %v1267_v55 = vld [vmem:[#allocation25 + $0x68] sm:$0xff] }
 0x472   : > { %2354 = vmatpush.msrb.mxu0 %v1250_v42  ;;  %v2161_v34 = vand.u32 2147483647, %v2038_v4  ;;  %vm2157_vm15 = vweird.f32 %v2038_v4  ;;  %2419 = vmatpush.msrb.mxu2 %v1269_v57  ;;  %v1266_v60 = vld [vmem:[#allocation25 + $0x60] sm:$0xff]  ;;  %v1265_v18 = vld [vmem:[#allocation25 + $0x58] sm:$0xff]  ;;  %v1264_v61 = vld [vmem:[#allocation25 + $0x50] sm:$0xff]  ;;  %vm4478_vm9 = vcmask 1042434  }
 0x473   : > { %2792 = vmatmul.msk.f32.vlgmr.msra.gmra.mxu0 %vm1961_vm7, %v2121_v6  ;;  %2396 = vmatpush.msrb.mxu1 %v1235_v8  ;;  %v2145_v16 = vsel %vm2144_vm12, %v4258_v47, %v2141_v12  ;;  %v1238_v47 = vld [vmem:[#allocation23] sm:$0xff]  ;;  %v1263_v62 = vld [vmem:[#allocation25 + $0x48] sm:$0xff]  ;;  %v1261_v21 = vld [vmem:[#allocation25 + $0x38] sm:$0xff]  ;;  %vm4479_vm4 = vcmask 1043459   ;;  %vm4480_vm10 = vcmask 1044484   ;;  %vm4481_vm1 = vcmask 1045509  }
 0x474   : > { %2355 = vmatpush.msrb.mxu0 %v1249_v39  ;;  %v2150_v22 = vsel %vm2147_vm13, %v2149_v14, %v2145_v16  ;;  %vm2162_vm3 = vcmp.eq.f32.partialorder %v2161_v34, 8.507059e+37  ;;  %2420 = vmatpush.msrb.mxu2 %v1268_v59  ;;  %v1262_v63 = vld [vmem:[#allocation25 + $0x40] sm:$0xff]  ;;  %v1260_v5 = vld [vmem:[#allocation25 + $0x30] sm:$0xff]  ;;  %v1259_v39 = vld [vmem:[#allocation25 + $0x28] sm:$0xff]  ;;  %vm4482_vm2 = vcmask 1046534   ;;  %vm4483_vm11 = vcmask 1047559  }
 0x475   : > { %2397 = vmatpush.msrb.mxu1 %v1234_v11  ;;  %v2151_v24 = vmul.f32 %v4164_v29, %v2150_v22  ;;  %v2164_v29 = vor.u32 1.1754944e-38, %v2163_v30 }
 0x476   : > { %2793 = vmatmul.msk.f32.vlgmr.msra.gmra.mxu1 %vm1961_vm7, %v2136_v23  ;;  %2356 = vmatpush.msrb.mxu0 %v1248_v13  ;;  %v3079_v58 = vpop.eup %3078 }
 0x477   : > { %2398 = vmatpush.msrb.mxu1 %v1233_v15  ;;  %v2153_v26 = vmul.f32 %v3079_v58, %v2038_v4  ;;  %2794 = vmatmul.msk.f32.vlgmr.msra.gmra.mxu2 %vm1961_vm7, %v2151_v24  ;;  %vm2158_vm14 = vweird.f32 %v3079_v58  ;;  %v1258_v24 = vld [vmem:[#allocation25 + $0x20] sm:$0xff] }
 0x478   : > { %2357 = vmatpush.msrb.mxu0 %v1247_v20  ;;  %vm2159_vm8 = vmor %vm2157_vm15, %vm2158_vm14  ;;  %2421 = vmatpush.msrb.mxu2 %v1267_v55 }
 0x479   : > { %v2154_v28 = vsub.f32 1.0, %v2153_v26  ;;  %2399 = vmatpush.msrb.mxu1 %v1232_v17  ;;  %v1256_v26 = vld [vmem:[#allocation25 + $0x10] sm:$0xff] }
 0x47a   : > { %2358 = vmatpush.msrb.mxu0 %v1246_v25  ;;  %2422 = vmatpush.msrb.mxu2 %v1266_v60  ;;  %v1257_v25 = vld [vmem:[#allocation25 + $0x18] sm:$0xff] }
 0x47b   : > { %v2155_v33 = vmul.f32 %v3079_v58, %v2154_v28  ;;  %2400 = vmatpush.msrb.mxu1 %v1231_v49  ;;  %v1254_v28 = vld [vmem:[#allocation25] sm:$0xff] }
 0x47c   : > { %2359 = vmatpush.msrb.mxu0 %v1245_v27  ;;  %2423 = vmatpush.msrb.mxu2 %v1265_v18  ;;  %v1255_v27 = vld [vmem:[#allocation25 + $0x8] sm:$0xff] }
 0x47d   : > { %v2156_v36 = vadd.f32 %v3079_v58, %v2155_v33  ;;  %2401 = vmatpush.msrb.mxu1 %v1230_v48 }
 0x47e   : > { %2360 = vmatpush.msrb.mxu0 %v1244_v31  ;;  %2424 = vmatpush.msrb.mxu2 %v1264_v61 }
 0x47f   : > { %v2160_v56 = vsel %vm2159_vm8, %v3079_v58, %v2156_v36  ;;  %2402 = vmatpush.msrb.mxu1 %v1229_v50 }
 0x480   : > { %2361 = vmatpush.msrb.mxu0 %v1243_v35  ;;  %v2165_v38 = vsel %vm2162_vm3, %v2164_v29, %v2160_v56  ;;  %2425 = vmatpush.msrb.mxu2 %v1263_v62  ;;  %v3027_v35 = vld [vmem:[%s4484_s27] ss:$0 sm:$0xff] }
 0x481   : > { %v2166_v43 = vmul.f32 %v4168_v32, %v2165_v38  ;;  %v1228_v32 = vld [vmem:[#allocation22 + $0x30] sm:$0xff] }
 0x482   : > { %2362 = vmatpush.msrb.mxu0 %v1242_v37  ;;  %2403 = vmatpush.msrb.mxu1 %v1228_v32 }
 0x483   : > { %2795 = vmatmul.msk.f32.vlgmr.msra.gmra.mxu3 %vm1961_vm7, %v2166_v43  ;;  %2426 = vmatpush.msrb.mxu2 %v1262_v63  ;;  %vm4477_vm7 = vcmask 1041409  }
 0x484   : > { %2363 = vmatpush.msrb.mxu0 %v1241_v41  ;;  %2404 = vmatpush.msrb.mxu1 %v1227_v40 }
 0x485   : > { %2427 = vmatpush.msrb.mxu2 %v1261_v21 }
 0x486   : > { %2364 = vmatpush.msrb.mxu0 %v1240_v44  ;;  %2405 = vmatpush.msrb.mxu1 %v1226_v51 }
 0x487   : > { %2428 = vmatpush.msrb.mxu2 %v1260_v5 }
 0x488   : > { %2365 = vmatpush.msrb.mxu0 %v1239_v46  ;;  %2406 = vmatpush.msrb.mxu1 %v1225_v52 }
 0x489   : > { %2429 = vmatpush.msrb.mxu2 %v1259_v39 }
 0x48a   : > { %2366 = vmatpush.msrb.mxu0 %v1238_v47  ;;  %2407 = vmatpush.msrb.mxu1 %v1224_v53 }
 0x48b   : > { %2367 = vmatmul.f32.vlgmr.msrb.gmra.mxu0 %v4133_v0  ;;  %v1222_v0 = vld [vmem:[#allocation22] sm:$0xff]  ;;  %2430 = vmatpush.msrb.mxu2 %v1258_v24 }
 0x48c   : > { %2408 = vmatpush.msrb.mxu1 %v1223_v54 }
 0x48d   : > { %2431 = vmatpush.msrb.mxu2 %v1257_v25 }
 0x48e   : > { %2409 = vmatpush.msrb.mxu1 %v1222_v0 }
 0x48f   : > { %2432 = vmatpush.msrb.mxu2 %v1256_v26 }
 0x491   : > { %2433 = vmatpush.msrb.mxu2 %v1255_v27 }
 0x493   : > { %2434 = vmatpush.msrb.mxu2 %v1254_v28 }
 0x4e8   : > { %v2187_v3 = vpop.f32.mrf.mxu0 }
 0x4ea   : > { %v2210_v19 = vpop.f32.mrf.mxu1 }
 0x4eb   : > { %v2379_v1 = vrot.slane %v2210_v19, 7 }
 0x4ed   : > { %v2380_v7 = vsel %vm4477_vm7, %v2379_v1, %v2187_v3 }
 0x4f0   : > { %v2279_v9 = vpop.f32.mrf.mxu0 }
 0x4f1   : > { %v2233_v42 = vpop.f32.mrf.mxu2  ;;  %v2385_v12 = vrot.slane %v2279_v9, 4 }
 0x4f2   : > { %v2381_v2 = vrot.slane %v2233_v42, 6  ;;  %v2256_v4 = vpop.f32.mrf.mxu3 }
 0x4f3   : > { %v2383_v8 = vrot.slane %v2256_v4, 5  ;;  %v2302_v10 = vpop.f32.mrf.mxu1 }
 0x4f4   : > { %v2382_v6 = vsel %vm4478_vm9, %v2381_v2, %v2380_v7  ;;  %v2387_v13 = vrot.slane %v2302_v10, 3 }
 0x4f5   : > { %v2384_v45 = vsel %vm4479_vm4, %v2383_v8, %v2382_v6 }
 0x4f6   : > { %v2386_v23 = vsel %vm4480_vm10, %v2385_v12, %v2384_v45 }
 0x4f7   : > { %v2388_v15 = vsel %vm4481_vm1, %v2387_v13, %v2386_v23 }
 0x4fa   : > { %v2325_v11 = vpop.f32.mrf.mxu2 }
 0x4fb   : > { %v2389_v14 = vrot.slane %v2325_v11, 2 }
 0x4fd   : > { %v2390_v16 = vsel %vm4482_vm2, %v2389_v14, %v2388_v15 }
 0x506   : > { %v2348_v20 = vpop.f32.mrf.mxu3 }
 0x507   : > { %v2391_v22 = vrot.slane %v2348_v20, 1 }
 0x508   : > { %v2368_v30 = vpop.f32.mrf.mxu0 }
 0x509   : > { %v2392_v58 = vsel %vm4483_vm11, %v2391_v22, %v2390_v16 }
 0x50a   : > { %2410 = vmatmul.f32.vlgmr.msrb.gmra.mxu1 %v2392_v58 }
 0x587   : > { %v2411_v31 = vpop.f32.mrf.mxu1 }
 0x588   : > { %v2412_v33 = vadd.f32 %v2411_v31, %v2368_v30 }
 0x58a   : > { %3080 = vtanh.f32 %v2412_v33 }
 0x590   : > { %v3081_v34 = vpop.eup %3080 }
 0x591   : > { %2415 = vst [vmem:[#allocation29] sm:$0xff] %v3081_v34  ;;  %2435 = vmatmul.f32.vlgmr.msrb.gmra.mxu2 %v3081_v34 }
 0x592   : > { %2866 = dma.vmem_to_hbm [thread:$0]  (%p4008_p10), %s2496_s23, 128, %s2498_s20, [#allocation28]  }
 0x614   : > { %v2436_v36 = vpop.f32.mrf.mxu2 }
 0x615   : > { %v2437_v29 = vadd.f32 %v3027_v35, %v2436_v36 }
 0x617   : > { %2439 = vmax.xlane.f32.xlu1 %v2437_v29 }
 0x68a   : > { %v2440_v37 = vpop.xlane.xlu1 %2439 }
 0x68b   : > { %v2441_v56 = vsub.f32 %v2437_v29, %v2440_v37 }
 0x68d   : > { %v2442_v38 = vmul.f32 1.442695, %v2441_v56 }
 0x68f   : > { %3082 = vpow2.f32 %v2442_v38 }
 0x695   : > { %v3083_v41 = vpop.eup %3082 }
 0x696   : > { %2444 = vadd.xlane.f32.xlu1 %v3083_v41 }
 0x709   : > { %v2445_v43 = vpop.xlane.xlu1 %2444 }
 0x70a   : > { %3084 = vlog2.f32 %v2445_v43 }
 0x710   : > { %v3085_v44 = vpop.eup %3084 }
 0x711   : > { %v2447_v46 = vmul.f32 0.6931472, %v3085_v44 }
 0x713   : > { %v2448_v47 = vadd.f32 %v2447_v46, %v2440_v37 }
 0x715   : > { %v2449_v17 = vsub.f32 %v2437_v29, %v2448_v47 }
 0x717   : > { %2450 = vst [vmem:[%s4078_s6] sm:$0xff] %v2449_v17 }
 0x718   : > { %3619 = shalt.err (!%p3616_p0)
}
 0x719   : > { %2862 = dma.vmem_to_hbm [thread:$0]  (%p4020_p13), %s2466_s11, 128, %s2468_s29, %s2452_s12  }
 0x71a   : > { %3677 = dma.done.wait (%p4008_p10), [#allocation28], 384  }
 0x71b   : > { %3679 = vsyncadd (%p4008_p10), [#allocation28], 4294966912 }
 0x71c PF: > { %p2956_p2 = scmp.ge.s32.totalorder %s3706_s28, 2  ;;  %s2519_s9 = sand.u32 1, %s3686_s2  }
 0x71d   : > { %s2520_s6 = scalar_lea.sflag [#allocation4], %s2519_s9 }
 0x71e   : > { %p2920_p5 = pnand %p2956_p2, %p4027_p4 }
 0x720   : > { %p2921_p6 = pneg %p2920_p5 }
 0x722   : > { %3681 = dma.done.wait (%p2921_p6), %s2520_s6, 128  }
 0x723   : > { %3683 = vsyncadd (%p2921_p6), %s2520_s6, 4294967168  ;;  %s46_s28 = sadd.s32 1, %s3706_s28   ;;  %s4489_s2 = smov %s3690_s25 }
 0x724   : > { %p43_p13 = scmp.ge.s32.totalorder %s46_s28, 10   ;;  %s4490_s25 = smov %s3694_s26 }
 0x725   : > { %s4491_s26 = smov %s4025_s24  ;;  %s4492_s27 = smov %s3702_s3 }
 0x726   : > { %s4493_s3 = smov %s4495_s22  ;;  %45 = sbr.rel (!%p43_p13) target bundleno = 33 (0x21), region = 224 }
 0x72b   :  { %2526 = vsyncpa [#allocation3], 1 }
 0x72c   :  { %2528 = vsyncpa [#allocation3 + $0x1], 1 }
 0x72d   :  { %2529 = vsyncpa [#allocation6], 1 }
 0x72e   :  { %2530 = vsyncpa [#allocation9], 1 }
 0x72f   :  { %2531 = vsyncpa [#allocation12], 1 }
 0x730   :  { %2532 = vsyncpa [#allocation15], 1 }
 0x731   :  { %2533 = vsyncpa [#allocation18], 1 }
 0x732   :  { %2534 = vsyncpa [#allocation21], 1 }
 0x733   :  { %2535 = vsyncpa [#allocation24], 1 }
 0x734   :  { %2536 = vsyncpa [#allocation4], 1 }
 0x735   :  { %2538 = vsyncpa [#allocation4 + $0x1], 1 }
 0x736   :  { %2539 = vsyncpa [#allocation28], 1 }

</bundles_post_ra>
